<compile_context>
chip_gen: v7x
topology: tpu7x:2x2x1
jax: 0.10.0
libtpu: 0.0.40
codegen_flags: <defaults>
</compile_context>

<pallas_src>
import jax
import jax.numpy as jnp
from jax.experimental import pallas as pl
from jax.experimental.pallas import tpu as pltpu

# padded layer widths (lane multiples)
D_IN = 784              # full-extent block on K of layer 1, no padding needed
H1, H2, H3 = 512, 256, 128   # padded 392 / 196 / 98
N_OUT_PAD = 128              # padded 10
N_OUT = 10                   # real number of classes


def mlp_kernel(x_ref, w1_ref, b1_ref, w2_ref, b2_ref,
               w3_ref, b3_ref, w4_ref, b4_ref, out_ref):
    # x arrives f32 (single HBM read); cast to bf16 for the MXU here.
    xb = x_ref[...].astype(jnp.bfloat16)

    # layer 1 + ReLU (bf16 MXU, f32 accumulate)
    h = jnp.dot(xb, w1_ref[...], preferred_element_type=jnp.float32)
    h = jnp.maximum(h + b1_ref[...], 0.0).astype(jnp.bfloat16)
    # layer 2 + ReLU
    h = jnp.dot(h, w2_ref[...], preferred_element_type=jnp.float32)
    h = jnp.maximum(h + b2_ref[...], 0.0).astype(jnp.bfloat16)
    # layer 3 + ReLU
    h = jnp.dot(h, w3_ref[...], preferred_element_type=jnp.float32)
    h = jnp.maximum(h + b3_ref[...], 0.0).astype(jnp.bfloat16)
    # layer 4 (logits), padded to 128 lanes
    logits = jnp.dot(h, w4_ref[...], preferred_element_type=jnp.float32)
    logits = logits + b4_ref[...]

    # mask padded columns so they cannot affect max / sum of log_softmax
    # (f32: exp(-1e30 - m) underflows cleanly to 0)
    col = jax.lax.broadcasted_iota(jnp.int32, logits.shape, 1)
    logits = jnp.where(col < N_OUT, logits, jnp.float32(-1e30))

    # stable log_softmax over last dim (f32 — v5e has no bf16 VPU/EUP path)
    m = jnp.max(logits, axis=-1, keepdims=True)
    shifted = logits - m
    lse = jnp.log(jnp.sum(jnp.exp(shifted), axis=-1, keepdims=True))
    out_ref[...] = shifted - lse


def _round_up(x, m):
    return (x + m - 1) // m * m


def _choose_tb(batch):
    """Batch tile: big enough to amortize per-step overhead / feed the MXU,
    but keep >= 2 grid steps when possible so v7x's 2 TensorCores both work."""
    b16 = max(16, _round_up(batch, 16))
    if b16 < 32:
        return b16                                   # single tiny tile
    return min(512, _round_up(b16 // 2, 16))         # >= 2 grid steps, <= 512


def prepare_params(params):
    """One-time param prep: pad to lane-multiple widths and cast weights to
    bf16.  Call once at init; pass the result to mnist_nn_forward."""
    (w1, b1), (w2, b2), (w3, b3), (w4, b4) = params

    def pad_w(w, rows, cols):
        return jnp.pad(
            w, ((0, rows - w.shape[0]), (0, cols - w.shape[1]))
        ).astype(jnp.bfloat16)

    def pad_b(b, cols):
        return jnp.pad(
            b.reshape(1, -1), ((0, 0), (0, cols - b.shape[0]))
        ).astype(jnp.float32)

    return (pad_w(w1, D_IN, H1), pad_b(b1, H1),
            pad_w(w2, H1, H2),   pad_b(b2, H2),
            pad_w(w3, H2, H3),   pad_b(b3, H3),
            pad_w(w4, H3, N_OUT_PAD), pad_b(b4, N_OUT_PAD))


def mnist_nn_forward(x_in, prepped_params):
    """x_in: (B, 1, 28, 28) float32. Returns (B, 10) log-probabilities."""
    B = x_in.shape[0]
    x = x_in.reshape(B, D_IN).astype(jnp.float32)

    TB = _choose_tb(B)
    B_pad = _round_up(B, TB)
    xp = jnp.pad(x, ((0, B_pad - B), (0, 0)))        # stays f32
    grid = (B_pad // TB,)

    x_spec = pl.BlockSpec((TB, D_IN), lambda i: (i, 0))
    out_spec = pl.BlockSpec((TB, N_OUT_PAD), lambda i: (i, 0))

    def const_spec(shape):
        # constant block index => weights/biases DMA'd once, resident across
        # grid steps
        return pl.BlockSpec(shape, lambda i: (0, 0))

    out = pl.pallas_call(
        mlp_kernel,
        out_shape=jax.ShapeDtypeStruct((B_pad, N_OUT_PAD), jnp.float32),
        grid=grid,
        in_specs=[x_spec,
                  const_spec((D_IN, H1)), const_spec((1, H1)),
                  const_spec((H1, H2)),   const_spec((1, H2)),
                  const_spec((H2, H3)),   const_spec((1, H3)),
                  const_spec((H3, N_OUT_PAD)), const_spec((1, N_OUT_PAD))],
        out_specs=out_spec,
        compiler_params=pltpu.CompilerParams(
            dimension_semantics=("parallel",)),
    )(xp, *prepped_params)

    return out[:B, :N_OUT]


def init_params(key):
    """Deterministic init mimicking PyTorch nn.Linear default U(-1/sqrt(fan_in), +)."""
    dims = [(784, 392), (392, 196), (196, 98), (98, 10)]
    params = []
    for (fan_in, fan_out) in dims:
        key, kw, kb = jax.random.split(key, 3)
        bound = 1.0 / jnp.sqrt(fan_in)
        # stored as (in, out) so kernel does x @ W  (== PyTorch x @ W.T + b)
        w = jax.random.uniform(kw, (fan_in, fan_out), jnp.float32, -bound, bound)
        b = jax.random.uniform(kb, (fan_out,), jnp.float32, -bound, bound)
        params.append((w, b))
    return params


if __name__ == "__main__":
    key = jax.random.PRNGKey(0)
    k_params, k_x = jax.random.split(key)

    params = init_params(k_params)
    prepped = prepare_params(params)        # one-time pad + bf16 cast

    # small deterministic batch of "MNIST-like" NCHW inputs
    x = jax.random.normal(k_x, (8, 1, 28, 28), jnp.float32)

    out = mnist_nn_forward(x, prepped)
    out = jax.block_until_ready(out)

    # sanity: log_softmax rows should exponentiate-sum to 1
    row_sums = jnp.exp(out).sum(axis=-1)
    assert out.shape == (8, 10)
    assert bool(jnp.all(jnp.abs(row_sums - 1.0) < 1e-3))

    # cross-check against a pure-JAX f32 reference (bf16 MXU => loose tol)
    def ref_forward(xin, ps):
        h = xin.reshape(xin.shape[0], 784)
        for i, (w, b) in enumerate(ps):
            h = h @ w + b
            if i < 3:
                h = jnp.maximum(h, 0.0)
        m = jnp.max(h, axis=-1, keepdims=True)
        s = h - m
        return s - jnp.log(jnp.sum(jnp.exp(s), axis=-1, keepdims=True))

    ref = ref_forward(x, params)
    assert bool(jnp.all(jnp.abs(out - ref) < 5e-2))

    print("KERNEL_OK")
</pallas_src>

<mosaic_0001>
module attributes {stable_mosaic.version = 11 : i64} {
  func.func @mlp_kernel(%arg0: i32, %arg1: memref<16x784xf32, #tpu.memory_space<vmem>>, %arg2: memref<784x512xbf16, #tpu.memory_space<vmem>>, %arg3: memref<1x512xf32, #tpu.memory_space<vmem>>, %arg4: memref<512x256xbf16, #tpu.memory_space<vmem>>, %arg5: memref<1x256xf32, #tpu.memory_space<vmem>>, %arg6: memref<256x128xbf16, #tpu.memory_space<vmem>>, %arg7: memref<1x128xf32, #tpu.memory_space<vmem>>, %arg8: memref<128x128xbf16, #tpu.memory_space<vmem>>, %arg9: memref<1x128xf32, #tpu.memory_space<vmem>>, %arg10: memref<16x128xf32, #tpu.memory_space<vmem>>) attributes {dimension_semantics = [#tpu.dimension_semantics<parallel>], iteration_bounds = array<i64: 1>, scalar_prefetch = 0 : i64, scratch_operands = 0 : i64, tpu.core_type = #tpu.core_type<tc>, window_params = [{transform_indices = @transform_0, window_bounds = array<i64: 16, 784>}, {pipeline_mode = #tpu.pipeline_mode<synchronous>, transform_indices = @transform_1, window_bounds = array<i64: 784, 512>}, {pipeline_mode = #tpu.pipeline_mode<synchronous>, transform_indices = @transform_2, window_bounds = array<i64: 1, 512>}, {pipeline_mode = #tpu.pipeline_mode<synchronous>, transform_indices = @transform_3, window_bounds = array<i64: 512, 256>}, {pipeline_mode = #tpu.pipeline_mode<synchronous>, transform_indices = @transform_4, window_bounds = array<i64: 1, 256>}, {pipeline_mode = #tpu.pipeline_mode<synchronous>, transform_indices = @transform_5, window_bounds = array<i64: 256, 128>}, {pipeline_mode = #tpu.pipeline_mode<synchronous>, transform_indices = @transform_6, window_bounds = array<i64: 1, 128>}, {pipeline_mode = #tpu.pipeline_mode<synchronous>, transform_indices = @transform_7, window_bounds = array<i64: 128, 128>}, {pipeline_mode = #tpu.pipeline_mode<synchronous>, transform_indices = @transform_8, window_bounds = array<i64: 1, 128>}, {transform_indices = @transform_9, window_bounds = array<i64: 16, 128>}]} {
    %c0 = arith.constant 0 : index
    %c0_0 = arith.constant 0 : index
    %0 = vector.load %arg1[%c0, %c0_0] : memref<16x784xf32, #tpu.memory_space<vmem>>, vector<16x784xf32>
    %1 = arith.truncf %0 : vector<16x784xf32> to vector<16x784xbf16>
    %c0_1 = arith.constant 0 : index
    %c0_2 = arith.constant 0 : index
    %2 = vector.load %arg2[%c0_1, %c0_2] : memref<784x512xbf16, #tpu.memory_space<vmem>>, vector<784x512xbf16>
    %cst = arith.constant dense<0.000000e+00> : vector<16x512xf32>
    %3 = tpu.matmul %1, %2, %cst {dimension_numbers = #tpu.dot_dimension_numbers<[1], [0], [0], [1], [0, 0, 1, 1], [], []>} : vector<16x784xbf16>, vector<784x512xbf16>, vector<16x512xf32> -> vector<16x512xf32>
    %c0_3 = arith.constant 0 : index
    %c0_4 = arith.constant 0 : index
    %4 = vector.load %arg3[%c0_3, %c0_4] : memref<1x512xf32, #tpu.memory_space<vmem>>, vector<1x512xf32>
    %5 = vector.broadcast %4 : vector<1x512xf32> to vector<16x512xf32>
    %6 = arith.addf %3, %5 : vector<16x512xf32>
    %cst_5 = arith.constant 0.000000e+00 : f32
    %7 = vector.broadcast %cst_5 : f32 to vector<16x512xf32>
    %8 = arith.maximumf %6, %7 : vector<16x512xf32>
    %9 = arith.truncf %8 : vector<16x512xf32> to vector<16x512xbf16>
    %c0_6 = arith.constant 0 : index
    %c0_7 = arith.constant 0 : index
    %10 = vector.load %arg4[%c0_6, %c0_7] : memref<512x256xbf16, #tpu.memory_space<vmem>>, vector<512x256xbf16>
    %cst_8 = arith.constant dense<0.000000e+00> : vector<16x256xf32>
    %11 = tpu.matmul %9, %10, %cst_8 {dimension_numbers = #tpu.dot_dimension_numbers<[1], [0], [0], [1], [0, 0, 1, 1], [], []>} : vector<16x512xbf16>, vector<512x256xbf16>, vector<16x256xf32> -> vector<16x256xf32>
    %c0_9 = arith.constant 0 : index
    %c0_10 = arith.constant 0 : index
    %12 = vector.load %arg5[%c0_9, %c0_10] : memref<1x256xf32, #tpu.memory_space<vmem>>, vector<1x256xf32>
    %13 = vector.broadcast %12 : vector<1x256xf32> to vector<16x256xf32>
    %14 = arith.addf %11, %13 : vector<16x256xf32>
    %cst_11 = arith.constant 0.000000e+00 : f32
    %15 = vector.broadcast %cst_11 : f32 to vector<16x256xf32>
    %16 = arith.maximumf %14, %15 : vector<16x256xf32>
    %17 = arith.truncf %16 : vector<16x256xf32> to vector<16x256xbf16>
    %c0_12 = arith.constant 0 : index
    %c0_13 = arith.constant 0 : index
    %18 = vector.load %arg6[%c0_12, %c0_13] : memref<256x128xbf16, #tpu.memory_space<vmem>>, vector<256x128xbf16>
    %cst_14 = arith.constant dense<0.000000e+00> : vector<16x128xf32>
    %19 = tpu.matmul %17, %18, %cst_14 {dimension_numbers = #tpu.dot_dimension_numbers<[1], [0], [0], [1], [0, 0, 1, 1], [], []>} : vector<16x256xbf16>, vector<256x128xbf16>, vector<16x128xf32> -> vector<16x128xf32>
    %c0_15 = arith.constant 0 : index
    %c0_16 = arith.constant 0 : index
    %20 = vector.load %arg7[%c0_15, %c0_16] : memref<1x128xf32, #tpu.memory_space<vmem>>, vector<1x128xf32>
    %21 = vector.broadcast %20 : vector<1x128xf32> to vector<16x128xf32>
    %22 = arith.addf %19, %21 : vector<16x128xf32>
    %cst_17 = arith.constant 0.000000e+00 : f32
    %23 = vector.broadcast %cst_17 : f32 to vector<16x128xf32>
    %24 = arith.maximumf %22, %23 : vector<16x128xf32>
    %25 = arith.truncf %24 : vector<16x128xf32> to vector<16x128xbf16>
    %c0_18 = arith.constant 0 : index
    %c0_19 = arith.constant 0 : index
    %26 = vector.load %arg8[%c0_18, %c0_19] : memref<128x128xbf16, #tpu.memory_space<vmem>>, vector<128x128xbf16>
    %cst_20 = arith.constant dense<0.000000e+00> : vector<16x128xf32>
    %27 = tpu.matmul %25, %26, %cst_20 {dimension_numbers = #tpu.dot_dimension_numbers<[1], [0], [0], [1], [0, 0, 1, 1], [], []>} : vector<16x128xbf16>, vector<128x128xbf16>, vector<16x128xf32> -> vector<16x128xf32>
    %c0_21 = arith.constant 0 : index
    %c0_22 = arith.constant 0 : index
    %28 = vector.load %arg9[%c0_21, %c0_22] : memref<1x128xf32, #tpu.memory_space<vmem>>, vector<1x128xf32>
    %29 = vector.broadcast %28 : vector<1x128xf32> to vector<16x128xf32>
    %30 = arith.addf %27, %29 : vector<16x128xf32>
    %31 = tpu.iota {dimensions = array<i32: 1>} : vector<16x128xi32>
    %c10_i32 = arith.constant 10 : i32
    %32 = vector.broadcast %c10_i32 : i32 to vector<16x128xi32>
    %33 = arith.cmpi slt, %31, %32 : vector<16x128xi32>
    %cst_23 = arith.constant -1.000000e+30 : f32
    %34 = vector.broadcast %cst_23 : f32 to vector<16x128xf32>
    %35 = arith.select %33, %30, %34 : vector<16x128xi1>, vector<16x128xf32>
    %cst_24 = arith.constant dense<0xFF800000> : vector<16xf32>
    %36 = vector.multi_reduction <maximumf>, %35, %cst_24 [1] : vector<16x128xf32> to vector<16xf32>
    %37 = vector.shape_cast %36 : vector<16xf32> to vector<16x1xf32>
    %38 = vector.broadcast %37 : vector<16x1xf32> to vector<16x128xf32>
    %39 = arith.subf %35, %38 : vector<16x128xf32>
    %40 = math.exp %39 : vector<16x128xf32>
    %cst_25 = arith.constant dense<0.000000e+00> : vector<16xf32>
    %41 = vector.multi_reduction <add>, %40, %cst_25 [1] : vector<16x128xf32> to vector<16xf32>
    %42 = vector.shape_cast %41 : vector<16xf32> to vector<16x1xf32>
    %43 = math.log %42 : vector<16x1xf32>
    %44 = vector.broadcast %43 : vector<16x1xf32> to vector<16x128xf32>
    %45 = arith.subf %39, %44 : vector<16x128xf32>
    %c0_26 = arith.constant 0 : index
    %c0_27 = arith.constant 0 : index
    %46 = vector.load %arg10[%c0_26, %c0_27] : memref<16x128xf32, #tpu.memory_space<vmem>>, vector<16x128xf32>
    tpu.vector_store %arg10[%c0_26, %c0_27], %45 {strides = array<i32>} : memref<16x128xf32, #tpu.memory_space<vmem>>, vector<16x128xf32>,
    return
  }
  func.func @transform_0(%arg0: i32) -> (i32, i32) {
    %c0_i32 = arith.constant 0 : i32
    %c0_i32_0 = arith.constant 0 : i32
    return %arg0, %c0_i32 : i32, i32
  }
  func.func @transform_1(%arg0: i32) -> (i32, i32) {
    %c0_i32 = arith.constant 0 : i32
    %c0_i32_0 = arith.constant 0 : i32
    %c0_i32_1 = arith.constant 0 : i32
    return %c0_i32, %c0_i32_0 : i32, i32
  }
  func.func @transform_2(%arg0: i32) -> (i32, i32) {
    %c0_i32 = arith.constant 0 : i32
    %c0_i32_0 = arith.constant 0 : i32
    %c0_i32_1 = arith.constant 0 : i32
    return %c0_i32, %c0_i32_0 : i32, i32
  }
  func.func @transform_3(%arg0: i32) -> (i32, i32) {
    %c0_i32 = arith.constant 0 : i32
    %c0_i32_0 = arith.constant 0 : i32
    %c0_i32_1 = arith.constant 0 : i32
    return %c0_i32, %c0_i32_0 : i32, i32
  }
  func.func @transform_4(%arg0: i32) -> (i32, i32) {
    %c0_i32 = arith.constant 0 : i32
    %c0_i32_0 = arith.constant 0 : i32
    %c0_i32_1 = arith.constant 0 : i32
    return %c0_i32, %c0_i32_0 : i32, i32
  }
  func.func @transform_5(%arg0: i32) -> (i32, i32) {
    %c0_i32 = arith.constant 0 : i32
    %c0_i32_0 = arith.constant 0 : i32
    %c0_i32_1 = arith.constant 0 : i32
    return %c0_i32, %c0_i32_0 : i32, i32
  }
  func.func @transform_6(%arg0: i32) -> (i32, i32) {
    %c0_i32 = arith.constant 0 : i32
    %c0_i32_0 = arith.constant 0 : i32
    %c0_i32_1 = arith.constant 0 : i32
    return %c0_i32, %c0_i32_0 : i32, i32
  }
  func.func @transform_7(%arg0: i32) -> (i32, i32) {
    %c0_i32 = arith.constant 0 : i32
    %c0_i32_0 = arith.constant 0 : i32
    %c0_i32_1 = arith.constant 0 : i32
    return %c0_i32, %c0_i32_0 : i32, i32
  }
  func.func @transform_8(%arg0: i32) -> (i32, i32) {
    %c0_i32 = arith.constant 0 : i32
    %c0_i32_0 = arith.constant 0 : i32
    %c0_i32_1 = arith.constant 0 : i32
    return %c0_i32, %c0_i32_0 : i32, i32
  }
  func.func @transform_9(%arg0: i32) -> (i32, i32) {
    %c0_i32 = arith.constant 0 : i32
    %c0_i32_0 = arith.constant 0 : i32
    return %arg0, %c0_i32 : i32, i32
  }
}

</mosaic_0001>

<bundles_post_ra>
// kernel: tpu_custom_call.1
= control target key start
LH: loop header
LB: loop body
LE: loop exit
PB: predicated region body
PF: predicated region fallthrough
CT: control target
= control target key end

     0   :  { %14 = vsyncpa [#allocation3], 0  ;;  %s3663_s0 = inlined_call_operand.hbm [shape: f32[16,784], index: 0, kind: input, shape index: {}]   ;;  %s3664_s1 = inlined_call_operand.hbm [shape: bf16[784,512], index: 1, kind: input, shape index: {}]   ;;  %s3665_s2 = inlined_call_operand.vmem [shape: f32[1,512], index: 2, kind: input, shape index: {}]   ;;  %s3666_s3 = inlined_call_operand.hbm [shape: bf16[512,256], index: 3, kind: input, shape index: {}]   ;;  %s3667_s4 = inlined_call_operand.vmem [shape: f32[1,256], index: 4, kind: input, shape index: {}]   ;;  %s3668_s5 = inlined_call_operand.hbm [shape: bf16[256,128], index: 5, kind: input, shape index: {}]   ;;  %s3669_s6 = inlined_call_operand.vmem [shape: f32[1,128], index: 6, kind: input, shape index: {}]   ;;  %s3670_s7 = inlined_call_operand.hbm [shape: bf16[128,128], index: 7, kind: input, shape index: {}]   ;;  %s3671_s8 = inlined_call_operand.vmem [shape: f32[1,128], index: 8, kind: input, shape index: {}]   ;;  %s3672_s9 = inlined_call_operand.hbm [shape: f32[16,128], index: 9, kind: output, shape index: {}]  }
   0x1   :  { %15 = vsyncpa [#allocation6], 0 }
   0x2   :  { %16 = vsyncpa [#allocation9], 0 }
   0x3   :  { %17 = vsyncpa [#allocation4], 0  ;;  %s3464_s30 = smov [#allocation5]   ;;  %s3324_s13 = scalar_lea.hbm %s3664_s1, 25088 }
   0x4   :  { %s35_s10 = sshll.u32 %s3464_s30, 4  ;;  %p3325_p0 = scmp.ne.s32.totalorder %s3664_s1, %s3324_s13  ;;  %s36_s10 = int_to_ptr.vmem [resolvable:$true] %s35_s10 }
   0x5   :  { %p3328_p1 = scmp.lt.u32.totalorder %s3324_s13, %s3664_s1 }
   0x7   :  { %p3330_p2 = pnand %p3328_p1, %p3325_p0 }
   0x9   :  { %3333 = shalt.err (!%p3330_p2)
}
   0xa   :  { %s3334_s18 = scalar_lea.vmem %s36_s10, 25088  ;;  %p3339_p4 = scmp.lt.s32.totalorder %s36_s10, %s36_s10 }
   0xb   :  { %p3335_p3 = scmp.ne.s32.totalorder %s36_s10, %s3334_s18  ;;  %p3340_p5 = scmp.lt.s32.totalorder %s3334_s18, %s3334_s18 }
   0xd   :  { %p3341_p6 = por %p3340_p5, %p3339_p4 }
   0xf   :  { %p3342_p7 = pnand %p3341_p6, %p3335_p3 }
  0x11   :  { %3345 = shalt.err (!%p3342_p7)
}
  0x12   :  { %s3465_s19 = smov 256   ;;  %s3466_s20 = smov 16  }
  0x13   :  { %41 = dma.hbm_to_vmem [thread:$0]  %s3664_s1, 25088, %s36_s10, [#allocation6], %s3465_s19, %s3465_s19, %s3466_s20  }
  0x14   :  { %s3467_s23 = smov [#allocation8]   ;;  %s3346_s27 = scalar_lea.hbm %s3668_s5, 2048 }
  0x15   :  { %s63_s24 = sshll.u32 %s3467_s23, 4  ;;  %p3347_p8 = scmp.ne.s32.totalorder %s3668_s5, %s3346_s27  ;;  %s64_s24 = int_to_ptr.vmem [resolvable:$true] %s63_s24 }
  0x16   :  { %p3350_p9 = scmp.lt.u32.totalorder %s3346_s27, %s3668_s5 }
  0x18   :  { %p3352_p10 = pnand %p3350_p9, %p3347_p8 }
  0x1a   :  { %3355 = shalt.err (!%p3352_p10)
}
  0x1b   :  { %s3356_s12 = scalar_lea.vmem %s64_s24, 2048  ;;  %p3361_p12 = scmp.lt.s32.totalorder %s64_s24, %s64_s24 }
  0x1c   :  { %p3357_p11 = scmp.ne.s32.totalorder %s64_s24, %s3356_s12  ;;  %p3362_p13 = scmp.lt.s32.totalorder %s3356_s12, %s3356_s12 }
  0x1e   :  { %p3363_p0 = por %p3362_p13, %p3361_p12 }
  0x20   :  { %p3364_p1 = pnand %p3363_p0, %p3357_p11 }
  0x22   :  { %3367 = shalt.err (!%p3364_p1)
}
  0x23   :  { %s3468_s1 = smov 64   ;;  %s3469_s10 = smov 4  }
  0x24   :  { %69 = dma.hbm_to_vmem [thread:$0]  %s3668_s5, 2048, %s64_s24, [#allocation9], %s3468_s1, %s3468_s1, %s3469_s10  }
  0x25   :  { %s3470_s15 = smov [#allocation2]   ;;  %s3368_s19 = scalar_lea.hbm %s3663_s0, 1792 }
  0x26   :  { %s23_s16 = sshll.u32 %s3470_s15, 4  ;;  %p3369_p2 = scmp.ne.s32.totalorder %s3663_s0, %s3368_s19  ;;  %s24_s16 = int_to_ptr.vmem [resolvable:$true] %s23_s16 }
  0x27   :  { %p3372_p3 = scmp.lt.u32.totalorder %s3368_s19, %s3663_s0 }
  0x29   :  { %p3374_p4 = pnand %p3372_p3, %p3369_p2 }
  0x2b   :  { %3377 = shalt.err (!%p3374_p4)
}
  0x2c   :  { %s3378_s25 = scalar_lea.vmem %s24_s16, 1792  ;;  %p3383_p6 = scmp.lt.s32.totalorder %s24_s16, %s24_s16 }
  0x2d   :  { %p3379_p5 = scmp.ne.s32.totalorder %s24_s16, %s3378_s25  ;;  %p3384_p7 = scmp.lt.s32.totalorder %s3378_s25, %s3378_s25 }
  0x2f   :  { %p3385_p8 = por %p3384_p7, %p3383_p6 }
  0x31   :  { %p3386_p9 = pnand %p3385_p8, %p3379_p5 }
  0x33   :  { %3389 = shalt.err (!%p3386_p9)
}
  0x34   :  { %s3471_s5 = smov 896   ;;  %s3472_s24 = smov 56  }
  0x35   :  { %29 = dma.hbm_to_vmem [thread:$0]  %s3663_s0, 1792, %s24_s16, [#allocation3], %s3471_s5, %s3471_s5, %s3472_s24  }
  0x36   :  { %s3473_s28 = smov [#allocation7]   ;;  %s3390_s12 = scalar_lea.hbm %s3666_s3, 8192 }
  0x37   :  { %s49_s29 = sshll.u32 %s3473_s28, 4  ;;  %p3391_p10 = scmp.ne.s32.totalorder %s3666_s3, %s3390_s12  ;;  %s50_s29 = int_to_ptr.vmem [resolvable:$true] %s49_s29 }
  0x38   :  { %p3394_p11 = scmp.lt.u32.totalorder %s3390_s12, %s3666_s3 }
  0x3a   :  { %p3396_p12 = pnand %p3394_p11, %p3391_p10 }
  0x3c   :  { %3399 = shalt.err (!%p3396_p12)
}
  0x3d   :  { %s3400_s18 = scalar_lea.vmem %s50_s29, 8192  ;;  %p3405_p0 = scmp.lt.s32.totalorder %s50_s29, %s50_s29 }
  0x3e   :  { %p3401_p13 = scmp.ne.s32.totalorder %s50_s29, %s3400_s18  ;;  %p3406_p1 = scmp.lt.s32.totalorder %s3400_s18, %s3400_s18 }
  0x40   :  { %p3407_p2 = por %p3406_p1, %p3405_p0 }
  0x42   :  { %p3408_p3 = pnand %p3407_p2, %p3401_p13 }
  0x44   :  { %3411 = shalt.err (!%p3408_p3)
}
  0x45   :  { %s3474_s0 = smov 128   ;;  %s3475_s16 = smov 8  }
  0x46   :  { %55 = dma.hbm_to_vmem [thread:$0]  %s3666_s3, 8192, %s50_s29, [#allocation6], %s3474_s0, %s3474_s0, %s3475_s16  }
  0x47   :  { %s3476_s21 = smov [#allocation10]   ;;  %s3412_s5 = scalar_lea.hbm %s3670_s7, 1024 }
  0x48   :  { %s77_s22 = sshll.u32 %s3476_s21, 4  ;;  %p3413_p4 = scmp.ne.s32.totalorder %s3670_s7, %s3412_s5  ;;  %s78_s22 = int_to_ptr.vmem [resolvable:$true] %s77_s22 }
  0x49   :  { %p3416_p5 = scmp.lt.u32.totalorder %s3412_s5, %s3670_s7 }
  0x4b   :  { %p3418_p6 = pnand %p3416_p5, %p3413_p4 }
  0x4d   :  { %3421 = shalt.err (!%p3418_p6)
}
  0x4e   :  { %s3422_s30 = scalar_lea.vmem %s78_s22, 1024  ;;  %p3427_p8 = scmp.lt.s32.totalorder %s78_s22, %s78_s22 }
  0x4f   :  { %p3423_p7 = scmp.ne.s32.totalorder %s78_s22, %s3422_s30  ;;  %p3428_p9 = scmp.lt.s32.totalorder %s3422_s30, %s3422_s30 }
  0x51   :  { %p3429_p10 = por %p3428_p9, %p3427_p8 }
  0x53   :  { %p3430_p11 = pnand %p3429_p10, %p3423_p7 }
  0x55   :  { %3433 = shalt.err (!%p3430_p11)
}
  0x56   :  { %83 = dma.hbm_to_vmem [thread:$0]  %s3670_s7, 1024, %s78_s22, [#allocation9], %s3468_s1, %s3468_s1, %s3469_s10  }
  0x57   :  { %3456 = dma.done.wait [#allocation3], 1792  }
  0x58   :  { %3457 = vsyncadd [#allocation3], 4294965504 }
  0x59   :  { %3458 = dma.done.wait [#allocation6], 33280  }
  0x5a   :  { %3459 = vsyncadd [#allocation6], 4294934016 }
  0x5b   :  { %3460 = dma.done.wait [#allocation9], 3072  }
  0x5c   :  { %3461 = vsyncadd [#allocation9], 4294964224  ;;  %v3477_v0 = vmov 0   ;;  %v2902_v1 = vld [vmem:[#allocation5 + $0x4] ss:$16 sps:$4 sm:$0xff]   ;;  %v115_v10 = vld [vmem:[#allocation2 + $0x68] sm:$0xff] }
  0x5d   :  { %1486 = vmatprep.mubr.bf16.mxu1 %v3477_v0  ;;  %v2904_v2 = vld [vmem:[#allocation5 + $0x604] ss:$16 sps:$4 sm:$0xff]   ;;  %1325 = vmatprep.subr.bf16.mxu0 %v2902_v1  ;;  %v2906_v3 = vld [vmem:[#allocation5] ss:$16 sps:$4 sm:$0xff]   ;;  %v2910_v6 = vld [vmem:[#allocation5 + $0x8] ss:$16 sps:$4 sm:$0xff]  }
  0x5e   :  { %v2907_v4 = vld [vmem:[#allocation5 + $0x600] ss:$16 sps:$4 sm:$0xff]   ;;  %1454 = vmatprep.subr.bf16.mxu1 %v2904_v2  ;;  %v2908_v5 = vld [vmem:[#allocation5 + $0x24] ss:$16 sps:$4 sm:$0xff]   ;;  %1326 = vmatpush1.bf16.msra.mxu0 %v2906_v3  ;;  %v2912_v7 = vld [vmem:[#allocation5 + $0xc] ss:$16 sps:$4 sm:$0xff]  }
  0x5f   :  { %1455 = vmatpush1.bf16.msra.mxu1 %v2907_v4  ;;  %1327 = vmatprep.subr.bf16.mxu0 %v2908_v5  ;;  %v2913_v8 = vld [vmem:[#allocation5 + $0x20] ss:$16 sps:$4 sm:$0xff]   ;;  %vm1321_vm0 = vcmask 130048   ;;  %v2914_v12 = vld [vmem:[#allocation5 + $0x44] ss:$16 sps:$4 sm:$0xff]   ;;  %v103_v51 = vld [vmem:[#allocation2 + $0x8] sm:$0xff] }
  0x60   :  { %v108_v9 = vld [vmem:[#allocation2 + $0x30] sm:$0xff]  ;;  %1497 = vmatprep.subr.bf16.mxu1 %v2912_v7  ;;  %v2916_v13 = vld [vmem:[#allocation5 + $0x28] ss:$16 sps:$4 sm:$0xff]   ;;  %v2918_v14 = vld [vmem:[#allocation5 + $0x2c] ss:$16 sps:$4 sm:$0xff]   ;;  %vm3479_vm1 = vmmov 0  }
  0x61   :  { %v3601_v11 = vpack.c.bf16 %v115_v10, %v108_v9  ;;  %v2919_v15 = vld [vmem:[#allocation5 + $0x40] ss:$16 sps:$4 sm:$0xff]   ;;  %v2920_v16 = vld [vmem:[#allocation5 + $0x64] ss:$16 sps:$4 sm:$0xff]   ;;  %v2924_v17 = vld [vmem:[#allocation5 + $0x4c] ss:$16 sps:$4 sm:$0xff]  }
  0x62   :  { %1328 = vmatpush1.bf16.msra.mxu0 %v2913_v8  ;;  %v2925_v18 = vld [vmem:[#allocation5 + $0x60] ss:$16 sps:$4 sm:$0xff]   ;;  %v2922_v19 = vld [vmem:[#allocation5 + $0x48] ss:$16 sps:$4 sm:$0xff]   ;;  %v2926_v20 = vld [vmem:[#allocation5 + $0x84] ss:$16 sps:$4 sm:$0xff]  }
  0x63   :  { %2702 = vmatmul.mubr.msk.bf16.vlgmr.msra.gmra.mrb[0].mxu1 %vm1321_vm0, %v3601_v11  ;;  %1329 = vmatprep.subr.bf16.mxu0 %v2914_v12  ;;  %v2930_v21 = vld [vmem:[#allocation5 + $0x6c] ss:$16 sps:$4 sm:$0xff]   ;;  %v2928_v22 = vld [vmem:[#allocation5 + $0x68] ss:$16 sps:$4 sm:$0xff]   ;;  %v2931_v23 = vld [vmem:[#allocation5 + $0x80] ss:$16 sps:$4 sm:$0xff]  }
  0x64   :  { %1498 = vmatpush1.bf16.msra.mxu1 %v2910_v6  ;;  %v2932_v24 = vld [vmem:[#allocation5 + $0xa4] ss:$16 sps:$4 sm:$0xff]   ;;  %v2936_v25 = vld [vmem:[#allocation5 + $0x8c] ss:$16 sps:$4 sm:$0xff]   ;;  %v2937_v26 = vld [vmem:[#allocation5 + $0xa0] ss:$16 sps:$4 sm:$0xff]  }
  0x65   :  { %1499 = vmatprep.subr.bf16.mxu1 %v2918_v14  ;;  %v2934_v27 = vld [vmem:[#allocation5 + $0x88] ss:$16 sps:$4 sm:$0xff]   ;;  %v2938_v28 = vld [vmem:[#allocation5 + $0xc4] ss:$16 sps:$4 sm:$0xff]   ;;  %v2942_v29 = vld [vmem:[#allocation5 + $0xac] ss:$16 sps:$4 sm:$0xff]  }
  0x66   :  { %1330 = vmatpush1.bf16.msra.mxu0 %v2919_v15  ;;  %v2940_v30 = vld [vmem:[#allocation5 + $0xa8] ss:$16 sps:$4 sm:$0xff]   ;;  %v2943_v31 = vld [vmem:[#allocation5 + $0xc0] ss:$16 sps:$4 sm:$0xff]   ;;  %v2944_v32 = vld [vmem:[#allocation5 + $0xe4] ss:$16 sps:$4 sm:$0xff]  }
  0x67   :  { %1331 = vmatprep.subr.bf16.mxu0 %v2920_v16  ;;  %v2948_v33 = vld [vmem:[#allocation5 + $0xcc] ss:$16 sps:$4 sm:$0xff]   ;;  %v2949_v34 = vld [vmem:[#allocation5 + $0xe0] ss:$16 sps:$4 sm:$0xff]   ;;  %v2946_v35 = vld [vmem:[#allocation5 + $0xc8] ss:$16 sps:$4 sm:$0xff]  }
  0x68   :  { %1500 = vmatpush1.bf16.msra.mxu1 %v2916_v13  ;;  %v2950_v36 = vld [vmem:[#allocation5 + $0x104] ss:$16 sps:$4 sm:$0xff]   ;;  %v2954_v37 = vld [vmem:[#allocation5 + $0xec] ss:$16 sps:$4 sm:$0xff]   ;;  %v2952_v38 = vld [vmem:[#allocation5 + $0xe8] ss:$16 sps:$4 sm:$0xff]  }
  0x69   :  { %1501 = vmatprep.subr.bf16.mxu1 %v2924_v17  ;;  %v2955_v39 = vld [vmem:[#allocation5 + $0x100] ss:$16 sps:$4 sm:$0xff]   ;;  %v2956_v40 = vld [vmem:[#allocation5 + $0x124] ss:$16 sps:$4 sm:$0xff]   ;;  %v2960_v41 = vld [vmem:[#allocation5 + $0x10c] ss:$16 sps:$4 sm:$0xff]  }
  0x6a   :  { %1332 = vmatpush1.bf16.msra.mxu0 %v2925_v18  ;;  %v2961_v42 = vld [vmem:[#allocation5 + $0x120] ss:$16 sps:$4 sm:$0xff]   ;;  %v2958_v43 = vld [vmem:[#allocation5 + $0x108] ss:$16 sps:$4 sm:$0xff]   ;;  %v2962_v44 = vld [vmem:[#allocation5 + $0x144] ss:$16 sps:$4 sm:$0xff]  }
  0x6b   :  { %1333 = vmatprep.subr.bf16.mxu0 %v2926_v20  ;;  %v2966_v45 = vld [vmem:[#allocation5 + $0x12c] ss:$16 sps:$4 sm:$0xff]   ;;  %v2964_v46 = vld [vmem:[#allocation5 + $0x128] ss:$16 sps:$4 sm:$0xff]   ;;  %v2967_v47 = vld [vmem:[#allocation5 + $0x140] ss:$16 sps:$4 sm:$0xff]  }
  0x6c   :  { %1502 = vmatpush1.bf16.msra.mxu1 %v2922_v19  ;;  %v2968_v48 = vld [vmem:[#allocation5 + $0x164] ss:$16 sps:$4 sm:$0xff]   ;;  %v2972_v49 = vld [vmem:[#allocation5 + $0x14c] ss:$16 sps:$4 sm:$0xff]   ;;  %v2970_v50 = vld [vmem:[#allocation5 + $0x148] ss:$16 sps:$4 sm:$0xff]  }
  0x6d   :  { %1503 = vmatprep.subr.bf16.mxu1 %v2930_v21  ;;  %v110_v52 = vld [vmem:[#allocation2 + $0x40] sm:$0xff]  ;;  %v2978_v56 = vld [vmem:[#allocation5 + $0x16c] ss:$16 sps:$4 sm:$0xff]   ;;  %v2976_v58 = vld [vmem:[#allocation5 + $0x168] ss:$16 sps:$4 sm:$0xff]  }
  0x6e   :  { %1334 = vmatpush1.bf16.msra.mxu0 %v2931_v23  ;;  %v2973_v53 = vld [vmem:[#allocation5 + $0x160] ss:$16 sps:$4 sm:$0xff]   ;;  %v117_v54 = vpack.c.bf16 %v110_v52, %v103_v51  ;;  %v2974_v55 = vld [vmem:[#allocation5 + $0x184] ss:$16 sps:$4 sm:$0xff]   ;;  %v2984_v60 = vld [vmem:[#allocation5 + $0x18c] ss:$16 sps:$4 sm:$0xff]  }
  0x6f   :  { %1335 = vmatprep.subr.bf16.mxu0 %v2932_v24  ;;  %v2979_v57 = vld [vmem:[#allocation5 + $0x180] ss:$16 sps:$4 sm:$0xff]   ;;  %v2980_v59 = vld [vmem:[#allocation5 + $0x1a4] ss:$16 sps:$4 sm:$0xff]   ;;  %v2982_v62 = vld [vmem:[#allocation5 + $0x188] ss:$16 sps:$4 sm:$0xff]  }
  0x70   :  { %1504 = vmatpush1.bf16.msra.mxu1 %v2928_v22  ;;  %1357 = vmatprep.mubr.bf16.mxu0 %v117_v54  ;;  %v2985_v61 = vld [vmem:[#allocation5 + $0x1a0] ss:$16 sps:$4 sm:$0xff]   ;;  %v2986_v63 = vld [vmem:[#allocation5 + $0x1c4] ss:$16 sps:$4 sm:$0xff]   ;;  %v2990_v1 = vld [vmem:[#allocation5 + $0x1ac] ss:$16 sps:$4 sm:$0xff]  }
  0x71   :  { %1505 = vmatprep.subr.bf16.mxu1 %v2936_v25  ;;  %1529 = vmatprep.mubr.bf16.mxu1 %v117_v54  ;;  %v2991_v2 = vld [vmem:[#allocation5 + $0x1c0] ss:$16 sps:$4 sm:$0xff]   ;;  %v2988_v3 = vld [vmem:[#allocation5 + $0x1a8] ss:$16 sps:$4 sm:$0xff]   ;;  %v2992_v4 = vld [vmem:[#allocation5 + $0x1e4] ss:$16 sps:$4 sm:$0xff]  }
  0x72   :  { %1336 = vmatpush1.bf16.msra.mxu0 %v2937_v26  ;;  %v2996_v5 = vld [vmem:[#allocation5 + $0x1cc] ss:$16 sps:$4 sm:$0xff]   ;;  %v2997_v6 = vld [vmem:[#allocation5 + $0x1e0] ss:$16 sps:$4 sm:$0xff]   ;;  %v2994_v9 = vld [vmem:[#allocation5 + $0x1c8] ss:$16 sps:$4 sm:$0xff]  }
  0x73   :  { %1337 = vmatprep.subr.bf16.mxu0 %v2938_v28  ;;  %v102_v7 = vld [vmem:[#allocation2] sm:$0xff]  ;;  %v109_v8 = vld [vmem:[#allocation2 + $0x38] sm:$0xff] }
  0x74   :  { %1506 = vmatpush1.bf16.msra.mxu1 %v2934_v27  ;;  %v3000_v10 = vld [vmem:[#allocation5 + $0x204] ss:$16 sps:$4 sm:$0xff]   ;;  %v3003_v12 = vld [vmem:[#allocation5 + $0x1ec] ss:$16 sps:$4 sm:$0xff]   ;;  %v116_v13 = vpack.c.bf16 %v109_v8, %v102_v7  ;;  %v2998_v14 = vld [vmem:[#allocation5 + $0x200] ss:$16 sps:$4 sm:$0xff]  }
  0x75   :  { %1507 = vmatprep.subr.bf16.mxu1 %v2942_v29  ;;  %v3001_v15 = vld [vmem:[#allocation5 + $0x1e8] ss:$16 sps:$4 sm:$0xff]   ;;  %v3006_v16 = vld [vmem:[#allocation5 + $0x224] ss:$16 sps:$4 sm:$0xff]   ;;  %v3009_v17 = vld [vmem:[#allocation5 + $0x20c] ss:$16 sps:$4 sm:$0xff]  }
  0x76   :  { %1338 = vmatpush1.bf16.msra.mxu0 %v2943_v31  ;;  %v3004_v18 = vld [vmem:[#allocation5 + $0x220] ss:$16 sps:$4 sm:$0xff]   ;;  %v3007_v19 = vld [vmem:[#allocation5 + $0x208] ss:$16 sps:$4 sm:$0xff]   ;;  %v3012_v20 = vld [vmem:[#allocation5 + $0x244] ss:$16 sps:$4 sm:$0xff]  }
  0x77   :  { %1339 = vmatprep.subr.bf16.mxu0 %v2944_v32  ;;  %v3015_v21 = vld [vmem:[#allocation5 + $0x22c] ss:$16 sps:$4 sm:$0xff]   ;;  %v3010_v22 = vld [vmem:[#allocation5 + $0x240] ss:$16 sps:$4 sm:$0xff]   ;;  %v3013_v23 = vld [vmem:[#allocation5 + $0x228] ss:$16 sps:$4 sm:$0xff]  }
  0x78   :  { %1508 = vmatpush1.bf16.msra.mxu1 %v2940_v30  ;;  %v3018_v24 = vld [vmem:[#allocation5 + $0x264] ss:$16 sps:$4 sm:$0xff]   ;;  %v3021_v25 = vld [vmem:[#allocation5 + $0x24c] ss:$16 sps:$4 sm:$0xff]   ;;  %v3016_v26 = vld [vmem:[#allocation5 + $0x260] ss:$16 sps:$4 sm:$0xff]  }
  0x79   :  { %1509 = vmatprep.subr.bf16.mxu1 %v2948_v33  ;;  %v3019_v27 = vld [vmem:[#allocation5 + $0x248] ss:$16 sps:$4 sm:$0xff]   ;;  %v3024_v28 = vld [vmem:[#allocation5 + $0x284] ss:$16 sps:$4 sm:$0xff]   ;;  %v3027_v29 = vld [vmem:[#allocation5 + $0x26c] ss:$16 sps:$4 sm:$0xff]  }
  0x7a   :  { %1340 = vmatpush1.bf16.msra.mxu0 %v2949_v34  ;;  %v3022_v30 = vld [vmem:[#allocation5 + $0x280] ss:$16 sps:$4 sm:$0xff]   ;;  %v3025_v31 = vld [vmem:[#allocation5 + $0x268] ss:$16 sps:$4 sm:$0xff]   ;;  %v3030_v32 = vld [vmem:[#allocation5 + $0x2a4] ss:$16 sps:$4 sm:$0xff]  }
  0x7b   :  { %1341 = vmatprep.subr.bf16.mxu0 %v2950_v36  ;;  %v3033_v33 = vld [vmem:[#allocation5 + $0x28c] ss:$16 sps:$4 sm:$0xff]   ;;  %v3028_v34 = vld [vmem:[#allocation5 + $0x2a0] ss:$16 sps:$4 sm:$0xff]   ;;  %v3036_v36 = vld [vmem:[#allocation5 + $0x2c4] ss:$16 sps:$4 sm:$0xff]  }
  0x7c   :  { %1510 = vmatpush1.bf16.msra.mxu1 %v2946_v35  ;;  %v3031_v35 = vld [vmem:[#allocation5 + $0x288] ss:$16 sps:$4 sm:$0xff]   ;;  %v3054_v51 = vld [vmem:[#allocation5 + $0x324] ss:$16 sps:$4 sm:$0xff]   ;;  %v3057_v52 = vld [vmem:[#allocation5 + $0x30c] ss:$16 sps:$4 sm:$0xff]  }
  0x7d   :  { %1511 = vmatprep.subr.bf16.mxu1 %v2954_v37  ;;  %v3039_v37 = vld [vmem:[#allocation5 + $0x2ac] ss:$16 sps:$4 sm:$0xff]   ;;  %v3055_v54 = vld [vmem:[#allocation5 + $0x308] ss:$16 sps:$4 sm:$0xff]   ;;  %v3084_v8 = vld [vmem:[#allocation5 + $0x3c4] ss:$16 sps:$4 sm:$0xff]  }
  0x7e   :  { %1342 = vmatpush1.bf16.msra.mxu0 %v2955_v39  ;;  %v105_v39 = vld [vmem:[#allocation2 + $0x18] sm:$0xff] }
  0x7f   :  { %1343 = vmatprep.subr.bf16.mxu0 %v2956_v40  ;;  %v112_v40 = vld [vmem:[#allocation2 + $0x50] sm:$0xff]  ;;  %v3079_v7 = vld [vmem:[#allocation5 + $0x388] ss:$16 sps:$4 sm:$0xff]  }
  0x80   :  { %1512 = vmatpush1.bf16.msra.mxu1 %v2952_v38  ;;  %v3034_v38 = vld [vmem:[#allocation5 + $0x2c0] ss:$16 sps:$4 sm:$0xff]  }
  0x81   :  { %1513 = vmatprep.subr.bf16.mxu1 %v2960_v41  ;;  %v3037_v41 = vld [vmem:[#allocation5 + $0x2a8] ss:$16 sps:$4 sm:$0xff]  }
  0x82   :  { %1344 = vmatpush1.bf16.msra.mxu0 %v2961_v42  ;;  %v119_v42 = vpack.c.bf16 %v112_v40, %v105_v39  ;;  %v3120_v39 = vld [vmem:[#allocation5 + $0x484] ss:$16 sps:$4 sm:$0xff]   ;;  %v3123_v40 = vld [vmem:[#allocation5 + $0x46c] ss:$16 sps:$4 sm:$0xff]  }
  0x83   :  { %1345 = vmatprep.subr.bf16.mxu0 %v2962_v44  ;;  %v3045_v44 = vld [vmem:[#allocation5 + $0x2cc] ss:$16 sps:$4 sm:$0xff]  }
  0x84   :  { %1514 = vmatpush1.bf16.msra.mxu1 %v2958_v43  ;;  %v3042_v43 = vld [vmem:[#allocation5 + $0x2e4] ss:$16 sps:$4 sm:$0xff]  }
  0x85   :  { %1515 = vmatprep.subr.bf16.mxu1 %v2966_v45  ;;  %v3040_v45 = vld [vmem:[#allocation5 + $0x2e0] ss:$16 sps:$4 sm:$0xff]  }
  0x86   :  { %1346 = vmatpush1.bf16.msra.mxu0 %v2967_v47  ;;  %v3048_v47 = vld [vmem:[#allocation5 + $0x304] ss:$16 sps:$4 sm:$0xff]  }
  0x87   :  { %1347 = vmatprep.subr.bf16.mxu0 %v2968_v48  ;;  %v3051_v48 = vld [vmem:[#allocation5 + $0x2ec] ss:$16 sps:$4 sm:$0xff]  }
  0x88   :  { %1516 = vmatpush1.bf16.msra.mxu1 %v2964_v46  ;;  %v3043_v46 = vld [vmem:[#allocation5 + $0x2c8] ss:$16 sps:$4 sm:$0xff]  }
  0x89   :  { %1517 = vmatprep.subr.bf16.mxu1 %v2972_v49  ;;  %v3046_v49 = vld [vmem:[#allocation5 + $0x300] ss:$16 sps:$4 sm:$0xff]  }
  0x8a   :  { %1348 = vmatpush1.bf16.msra.mxu0 %v2973_v53  ;;  %v3052_v53 = vld [vmem:[#allocation5 + $0x320] ss:$16 sps:$4 sm:$0xff]  }
  0x8b   :  { %1349 = vmatprep.subr.bf16.mxu0 %v2974_v55  ;;  %v3060_v55 = vld [vmem:[#allocation5 + $0x344] ss:$16 sps:$4 sm:$0xff]  }
  0x8c   :  { %1518 = vmatpush1.bf16.msra.mxu1 %v2970_v50  ;;  %v3049_v50 = vld [vmem:[#allocation5 + $0x2e8] ss:$16 sps:$4 sm:$0xff]  }
  0x8d   :  { %1519 = vmatprep.subr.bf16.mxu1 %v2978_v56  ;;  %v3063_v56 = vld [vmem:[#allocation5 + $0x32c] ss:$16 sps:$4 sm:$0xff]  }
  0x8e   :  { %1350 = vmatpush1.bf16.msra.mxu0 %v2979_v57  ;;  %v3058_v57 = vld [vmem:[#allocation5 + $0x340] ss:$16 sps:$4 sm:$0xff]  }
  0x8f   :  { %1351 = vmatprep.subr.bf16.mxu0 %v2980_v59  ;;  %v3066_v59 = vld [vmem:[#allocation5 + $0x364] ss:$16 sps:$4 sm:$0xff]  }
  0x90   :  { %1520 = vmatpush1.bf16.msra.mxu1 %v2976_v58  ;;  %v3061_v58 = vld [vmem:[#allocation5 + $0x328] ss:$16 sps:$4 sm:$0xff]  }
  0x91   :  { %1521 = vmatprep.subr.bf16.mxu1 %v2984_v60  ;;  %v3069_v60 = vld [vmem:[#allocation5 + $0x34c] ss:$16 sps:$4 sm:$0xff]  }
  0x92   :  { %1352 = vmatpush1.bf16.msra.mxu0 %v2985_v61  ;;  %v3064_v61 = vld [vmem:[#allocation5 + $0x360] ss:$16 sps:$4 sm:$0xff]  }
  0x93   :  { %1353 = vmatprep.subr.bf16.mxu0 %v2986_v63  ;;  %v3072_v63 = vld [vmem:[#allocation5 + $0x384] ss:$16 sps:$4 sm:$0xff]  }
  0x94   :  { %1522 = vmatpush1.bf16.msra.mxu1 %v2982_v62  ;;  %v3067_v62 = vld [vmem:[#allocation5 + $0x348] ss:$16 sps:$4 sm:$0xff]  }
  0x95   :  { %1523 = vmatprep.subr.bf16.mxu1 %v2990_v1  ;;  %v3075_v1 = vld [vmem:[#allocation5 + $0x36c] ss:$16 sps:$4 sm:$0xff]  }
  0x96   :  { %1354 = vmatpush1.bf16.msra.mxu0 %v2991_v2  ;;  %v3070_v2 = vld [vmem:[#allocation5 + $0x380] ss:$16 sps:$4 sm:$0xff]  }
  0x97   :  { %1355 = vmatprep.subr.bf16.mxu0 %v2992_v4  ;;  %v3078_v4 = vld [vmem:[#allocation5 + $0x3a4] ss:$16 sps:$4 sm:$0xff]  }
  0x98   :  { %1524 = vmatpush1.bf16.msra.mxu1 %v2988_v3  ;;  %v3073_v3 = vld [vmem:[#allocation5 + $0x368] ss:$16 sps:$4 sm:$0xff]  }
  0x99   :  { %1525 = vmatprep.subr.bf16.mxu1 %v2996_v5  ;;  %v3081_v5 = vld [vmem:[#allocation5 + $0x38c] ss:$16 sps:$4 sm:$0xff]  }
  0x9a   :  { %1356 = vmatpush1.bf16.msra.mxu0 %v2997_v6  ;;  %v3076_v6 = vld [vmem:[#allocation5 + $0x3a0] ss:$16 sps:$4 sm:$0xff]  }
  0x9b   :  { %1368 = vmatprep.subr.bf16.mxu0 %v3000_v10  ;;  %v3082_v10 = vld [vmem:[#allocation5 + $0x3c0] ss:$16 sps:$4 sm:$0xff]  }
  0x9c   :  { %1526 = vmatpush1.bf16.msra.mxu1 %v2994_v9  ;;  %v3087_v9 = vld [vmem:[#allocation5 + $0x3ac] ss:$16 sps:$4 sm:$0xff]  }
  0x9d   :  { %1527 = vmatprep.subr.bf16.mxu1 %v3003_v12  ;;  %1358 = vmatmul.mubr.bf16.vlgmr.msra.gmra.mrb[0].mxu0 %v116_v13  ;;  %v3085_v12 = vld [vmem:[#allocation5 + $0x3a8] ss:$16 sps:$4 sm:$0xff]  }
  0x9e   :  { %1369 = vmatpush1.bf16.msra.mxu0 %v2998_v14  ;;  %1400 = vmatprep.mubr.bf16.mxu0 %v119_v42  ;;  %v3093_v14 = vld [vmem:[#allocation5 + $0x3cc] ss:$16 sps:$4 sm:$0xff]  }
  0x9f   :  { %1370 = vmatprep.subr.bf16.mxu0 %v3006_v16  ;;  %v104_v16 = vld [vmem:[#allocation2 + $0x10] sm:$0xff] }
  0xa0   :  { %1528 = vmatpush1.bf16.msra.mxu1 %v3001_v15  ;;  %v3088_v15 = vld [vmem:[#allocation5 + $0x3e0] ss:$16 sps:$4 sm:$0xff]  }
  0xa1   :  { %1540 = vmatprep.subr.bf16.mxu1 %v3009_v17  ;;  %v111_v17 = vld [vmem:[#allocation2 + $0x48] sm:$0xff] }
  0xa2   :  { %1371 = vmatpush1.bf16.msra.mxu0 %v3004_v18  ;;  %v3091_v18 = vld [vmem:[#allocation5 + $0x3c8] ss:$16 sps:$4 sm:$0xff]  }
  0xa3   :  { %1530 = vmatmul.mubr.bf16.vlgmr.msra.gmra.mrb[4].mxu1 %v116_v13  ;;  %1372 = vmatprep.subr.bf16.mxu0 %v3012_v20  ;;  %v3090_v13 = vld [vmem:[#allocation5 + $0x3e4] ss:$16 sps:$4 sm:$0xff]   ;;  %v3099_v20 = vld [vmem:[#allocation5 + $0x3ec] ss:$16 sps:$4 sm:$0xff]  }
  0xa4   :  { %1541 = vmatpush1.bf16.msra.mxu1 %v3007_v19  ;;  %1572 = vmatprep.mubr.bf16.mxu1 %v119_v42  ;;  %v3096_v19 = vld [vmem:[#allocation5 + $0x404] ss:$16 sps:$4 sm:$0xff]   ;;  %v3121_v42 = vld [vmem:[#allocation5 + $0x468] ss:$16 sps:$4 sm:$0xff]  }
  0xa5   :  { %1542 = vmatprep.subr.bf16.mxu1 %v3015_v21  ;;  %v118_v21 = vpack.c.bf16 %v111_v17, %v104_v16  ;;  %v3175_v16 = vld [vmem:[#allocation5 + $0x588] ss:$16 sps:$4 sm:$0xff]   ;;  %v3180_v17 = vld [vmem:[#allocation5 + $0x5c4] ss:$16 sps:$4 sm:$0xff]  }
  0xa6   :  { %1373 = vmatpush1.bf16.msra.mxu0 %v3010_v22  ;;  %v3094_v22 = vld [vmem:[#allocation5 + $0x400] ss:$16 sps:$4 sm:$0xff]  }
  0xa7   :  { %1374 = vmatprep.subr.bf16.mxu0 %v3018_v24  ;;  %v3102_v24 = vld [vmem:[#allocation5 + $0x424] ss:$16 sps:$4 sm:$0xff]  }
  0xa8   :  { %1543 = vmatpush1.bf16.msra.mxu1 %v3013_v23  ;;  %v3097_v23 = vld [vmem:[#allocation5 + $0x3e8] ss:$16 sps:$4 sm:$0xff]  }
  0xa9   :  { %1544 = vmatprep.subr.bf16.mxu1 %v3021_v25  ;;  %v3105_v25 = vld [vmem:[#allocation5 + $0x40c] ss:$16 sps:$4 sm:$0xff]  }
  0xaa   :  { %1375 = vmatpush1.bf16.msra.mxu0 %v3016_v26  ;;  %v107_v26 = vld [vmem:[#allocation2 + $0x28] sm:$0xff] }
  0xab   :  { %1376 = vmatprep.subr.bf16.mxu0 %v3024_v28  ;;  %v3100_v28 = vld [vmem:[#allocation5 + $0x420] ss:$16 sps:$4 sm:$0xff]  }
  0xac   :  { %1545 = vmatpush1.bf16.msra.mxu1 %v3019_v27  ;;  %v114_v27 = vld [vmem:[#allocation2 + $0x60] sm:$0xff] }
  0xad   :  { %1546 = vmatprep.subr.bf16.mxu1 %v3027_v29  ;;  %v121_v29 = vpack.c.bf16 %v114_v27, %v107_v26  ;;  %v3187_v26 = vld [vmem:[#allocation5 + $0x5c8] ss:$16 sps:$4 sm:$0xff]   ;;  %v3198_v27 = vld [vmem:[#allocation7 + $0x4] ss:$8 sps:$4 sm:$0xff]  }
  0xae   :  { %1377 = vmatpush1.bf16.msra.mxu0 %v3022_v30  ;;  %v3103_v30 = vld [vmem:[#allocation5 + $0x408] ss:$16 sps:$4 sm:$0xff]  }
  0xaf   :  { %1378 = vmatprep.subr.bf16.mxu0 %v3030_v32  ;;  %v3111_v32 = vld [vmem:[#allocation5 + $0x42c] ss:$16 sps:$4 sm:$0xff]  }
  0xb0   :  { %1547 = vmatpush1.bf16.msra.mxu1 %v3025_v31  ;;  %v3108_v31 = vld [vmem:[#allocation5 + $0x444] ss:$16 sps:$4 sm:$0xff]  }
  0xb1   :  { %1548 = vmatprep.subr.bf16.mxu1 %v3033_v33  ;;  %v3106_v33 = vld [vmem:[#allocation5 + $0x440] ss:$16 sps:$4 sm:$0xff]  }
  0xb2   :  { %1379 = vmatpush1.bf16.msra.mxu0 %v3028_v34  ;;  %v3109_v34 = vld [vmem:[#allocation5 + $0x428] ss:$16 sps:$4 sm:$0xff]  }
  0xb3   :  { %1380 = vmatprep.subr.bf16.mxu0 %v3036_v36  ;;  %v3117_v36 = vld [vmem:[#allocation5 + $0x44c] ss:$16 sps:$4 sm:$0xff]  }
  0xb4   :  { %1549 = vmatpush1.bf16.msra.mxu1 %v3031_v35  ;;  %v3114_v35 = vld [vmem:[#allocation5 + $0x464] ss:$16 sps:$4 sm:$0xff]  }
  0xb5   :  { %1550 = vmatprep.subr.bf16.mxu1 %v3039_v37  ;;  %v3112_v37 = vld [vmem:[#allocation5 + $0x460] ss:$16 sps:$4 sm:$0xff]  }
  0xb6   :  { %1381 = vmatpush1.bf16.msra.mxu0 %v3034_v38  ;;  %v3115_v38 = vld [vmem:[#allocation5 + $0x448] ss:$16 sps:$4 sm:$0xff]  }
  0xb7   :  { %1382 = vmatprep.subr.bf16.mxu0 %v3042_v43  ;;  %v3126_v43 = vld [vmem:[#allocation5 + $0x4a4] ss:$16 sps:$4 sm:$0xff]  }
  0xb8   :  { %1551 = vmatpush1.bf16.msra.mxu1 %v3037_v41  ;;  %v3118_v41 = vld [vmem:[#allocation5 + $0x480] ss:$16 sps:$4 sm:$0xff]  }
  0xb9   :  { %1552 = vmatprep.subr.bf16.mxu1 %v3045_v44  ;;  %v3129_v44 = vld [vmem:[#allocation5 + $0x48c] ss:$16 sps:$4 sm:$0xff]  }
  0xba   :  { %1383 = vmatpush1.bf16.msra.mxu0 %v3040_v45  ;;  %v3124_v45 = vld [vmem:[#allocation5 + $0x4a0] ss:$16 sps:$4 sm:$0xff]  }
  0xbb   :  { %1384 = vmatprep.subr.bf16.mxu0 %v3048_v47  ;;  %v3132_v47 = vld [vmem:[#allocation5 + $0x4c4] ss:$16 sps:$4 sm:$0xff]  }
  0xbc   :  { %1553 = vmatpush1.bf16.msra.mxu1 %v3043_v46  ;;  %v3127_v46 = vld [vmem:[#allocation5 + $0x488] ss:$16 sps:$4 sm:$0xff]  }
  0xbd   :  { %1554 = vmatprep.subr.bf16.mxu1 %v3051_v48  ;;  %v3135_v48 = vld [vmem:[#allocation5 + $0x4ac] ss:$16 sps:$4 sm:$0xff]  }
  0xbe   :  { %1385 = vmatpush1.bf16.msra.mxu0 %v3046_v49  ;;  %v3130_v49 = vld [vmem:[#allocation5 + $0x4c0] ss:$16 sps:$4 sm:$0xff]  }
  0xbf   :  { %1386 = vmatprep.subr.bf16.mxu0 %v3054_v51  ;;  %v3138_v51 = vld [vmem:[#allocation5 + $0x4e4] ss:$16 sps:$4 sm:$0xff]  }
  0xc0   :  { %1555 = vmatpush1.bf16.msra.mxu1 %v3049_v50  ;;  %v3133_v50 = vld [vmem:[#allocation5 + $0x4a8] ss:$16 sps:$4 sm:$0xff]  }
  0xc1   :  { %1556 = vmatprep.subr.bf16.mxu1 %v3057_v52  ;;  %v3141_v52 = vld [vmem:[#allocation5 + $0x4cc] ss:$16 sps:$4 sm:$0xff]  }
  0xc2   :  { %1387 = vmatpush1.bf16.msra.mxu0 %v3052_v53  ;;  %v3136_v53 = vld [vmem:[#allocation5 + $0x4e0] ss:$16 sps:$4 sm:$0xff]  }
  0xc3   :  { %1388 = vmatprep.subr.bf16.mxu0 %v3060_v55  ;;  %v3144_v55 = vld [vmem:[#allocation5 + $0x504] ss:$16 sps:$4 sm:$0xff]  }
  0xc4   :  { %1557 = vmatpush1.bf16.msra.mxu1 %v3055_v54  ;;  %v3139_v54 = vld [vmem:[#allocation5 + $0x4c8] ss:$16 sps:$4 sm:$0xff]  }
  0xc5   :  { %1558 = vmatprep.subr.bf16.mxu1 %v3063_v56  ;;  %v3147_v56 = vld [vmem:[#allocation5 + $0x4ec] ss:$16 sps:$4 sm:$0xff]  }
  0xc6   :  { %1389 = vmatpush1.bf16.msra.mxu0 %v3058_v57  ;;  %v3142_v57 = vld [vmem:[#allocation5 + $0x500] ss:$16 sps:$4 sm:$0xff]  }
  0xc7   :  { %1390 = vmatprep.subr.bf16.mxu0 %v3066_v59  ;;  %v3150_v59 = vld [vmem:[#allocation5 + $0x524] ss:$16 sps:$4 sm:$0xff]  }
  0xc8   :  { %1559 = vmatpush1.bf16.msra.mxu1 %v3061_v58  ;;  %v3145_v58 = vld [vmem:[#allocation5 + $0x4e8] ss:$16 sps:$4 sm:$0xff]  }
  0xc9   :  { %1560 = vmatprep.subr.bf16.mxu1 %v3069_v60  ;;  %v3153_v60 = vld [vmem:[#allocation5 + $0x50c] ss:$16 sps:$4 sm:$0xff]  }
  0xca   :  { %1391 = vmatpush1.bf16.msra.mxu0 %v3064_v61  ;;  %v3148_v61 = vld [vmem:[#allocation5 + $0x520] ss:$16 sps:$4 sm:$0xff]  }
  0xcb   :  { %1392 = vmatprep.subr.bf16.mxu0 %v3072_v63  ;;  %v3156_v63 = vld [vmem:[#allocation5 + $0x544] ss:$16 sps:$4 sm:$0xff]  }
  0xcc   :  { %1561 = vmatpush1.bf16.msra.mxu1 %v3067_v62  ;;  %v3151_v62 = vld [vmem:[#allocation5 + $0x508] ss:$16 sps:$4 sm:$0xff]  }
  0xcd   :  { %1562 = vmatprep.subr.bf16.mxu1 %v3075_v1  ;;  %v3159_v1 = vld [vmem:[#allocation5 + $0x52c] ss:$16 sps:$4 sm:$0xff]  }
  0xce   :  { %1393 = vmatpush1.bf16.msra.mxu0 %v3070_v2  ;;  %v3154_v2 = vld [vmem:[#allocation5 + $0x540] ss:$16 sps:$4 sm:$0xff]  }
  0xcf   :  { %1394 = vmatprep.subr.bf16.mxu0 %v3078_v4  ;;  %v3162_v4 = vld [vmem:[#allocation5 + $0x564] ss:$16 sps:$4 sm:$0xff]  }
  0xd0   :  { %1563 = vmatpush1.bf16.msra.mxu1 %v3073_v3  ;;  %v3157_v3 = vld [vmem:[#allocation5 + $0x528] ss:$16 sps:$4 sm:$0xff]  }
  0xd1   :  { %1564 = vmatprep.subr.bf16.mxu1 %v3081_v5  ;;  %v3165_v5 = vld [vmem:[#allocation5 + $0x54c] ss:$16 sps:$4 sm:$0xff]  }
  0xd2   :  { %1395 = vmatpush1.bf16.msra.mxu0 %v3076_v6  ;;  %v3160_v6 = vld [vmem:[#allocation5 + $0x560] ss:$16 sps:$4 sm:$0xff]  }
  0xd3   :  { %1396 = vmatprep.subr.bf16.mxu0 %v3084_v8  ;;  %v3168_v8 = vld [vmem:[#allocation5 + $0x584] ss:$16 sps:$4 sm:$0xff]  }
  0xd4   :  { %1565 = vmatpush1.bf16.msra.mxu1 %v3079_v7  ;;  %v3163_v7 = vld [vmem:[#allocation5 + $0x548] ss:$16 sps:$4 sm:$0xff]  }
  0xd5   :  { %1566 = vmatprep.subr.bf16.mxu1 %v3087_v9  ;;  %v3171_v9 = vld [vmem:[#allocation5 + $0x56c] ss:$16 sps:$4 sm:$0xff]  }
  0xd6   :  { %1397 = vmatpush1.bf16.msra.mxu0 %v3082_v10  ;;  %v3166_v10 = vld [vmem:[#allocation5 + $0x580] ss:$16 sps:$4 sm:$0xff]  }
  0xd7   :  { %1398 = vmatprep.subr.bf16.mxu0 %v3090_v13  ;;  %v3174_v13 = vld [vmem:[#allocation5 + $0x5a4] ss:$16 sps:$4 sm:$0xff]  }
  0xd8   :  { %1567 = vmatpush1.bf16.msra.mxu1 %v3085_v12  ;;  %v3169_v12 = vld [vmem:[#allocation5 + $0x568] ss:$16 sps:$4 sm:$0xff]  }
  0xd9   :  { %1568 = vmatprep.subr.bf16.mxu1 %v3093_v14  ;;  %v3177_v14 = vld [vmem:[#allocation5 + $0x58c] ss:$16 sps:$4 sm:$0xff]  }
  0xda   :  { %1399 = vmatpush1.bf16.msra.mxu0 %v3088_v15  ;;  %v3172_v15 = vld [vmem:[#allocation5 + $0x5a0] ss:$16 sps:$4 sm:$0xff]  }
  0xdb   :  { %1411 = vmatprep.subr.bf16.mxu0 %v3096_v19  ;;  %v3178_v19 = vld [vmem:[#allocation5 + $0x5c0] ss:$16 sps:$4 sm:$0xff]  }
  0xdc   :  { %1569 = vmatpush1.bf16.msra.mxu1 %v3091_v18  ;;  %v3183_v18 = vld [vmem:[#allocation5 + $0x5ac] ss:$16 sps:$4 sm:$0xff]  }
  0xdd   :  { %1570 = vmatprep.subr.bf16.mxu1 %v3099_v20  ;;  %1401 = vmatmul.mubr.bf16.vlgmr.msra.gmra.mrb[0].mxu0 %v118_v21  ;;  %v3181_v20 = vld [vmem:[#allocation5 + $0x5a8] ss:$16 sps:$4 sm:$0xff]  }
  0xde   :  { %1412 = vmatpush1.bf16.msra.mxu0 %v3094_v22  ;;  %1443 = vmatprep.mubr.bf16.mxu0 %v121_v29  ;;  %v3189_v22 = vld [vmem:[#allocation5 + $0x5cc] ss:$16 sps:$4 sm:$0xff]  }
  0xdf   :  { %1413 = vmatprep.subr.bf16.mxu0 %v3102_v24  ;;  %v106_v24 = vld [vmem:[#allocation2 + $0x20] sm:$0xff] }
  0xe0   :  { %1571 = vmatpush1.bf16.msra.mxu1 %v3097_v23  ;;  %v3184_v23 = vld [vmem:[#allocation5 + $0x5e0] ss:$16 sps:$4 sm:$0xff]  }
  0xe1   :  { %1583 = vmatprep.subr.bf16.mxu1 %v3105_v25  ;;  %v113_v25 = vld [vmem:[#allocation2 + $0x58] sm:$0xff] }
  0xe2   :  { %1414 = vmatpush1.bf16.msra.mxu0 %v3100_v28  ;;  %v3192_v28 = vld [vmem:[#allocation5 + $0x5ec] ss:$16 sps:$4 sm:$0xff]  }
  0xe3   :  { %1573 = vmatmul.mubr.bf16.vlgmr.msra.gmra.mrb[4].mxu1 %v118_v21  ;;  %1415 = vmatprep.subr.bf16.mxu0 %v3108_v31  ;;  %v3186_v21 = vld [vmem:[#allocation5 + $0x5e4] ss:$16 sps:$4 sm:$0xff]   ;;  %v3190_v31 = vld [vmem:[#allocation5 + $0x5e8] ss:$16 sps:$4 sm:$0xff]  }
  0xe4   :  { %1584 = vmatpush1.bf16.msra.mxu1 %v3103_v30  ;;  %1615 = vmatprep.mubr.bf16.mxu1 %v121_v29  ;;  %v120_v29 = vpack.c.bf16 %v113_v25, %v106_v24  ;;  %v3196_v30 = vld [vmem:[#allocation7] ss:$8 sps:$4 sm:$0xff]  }
  0xe5   :  { %1585 = vmatprep.subr.bf16.mxu1 %v3111_v32  ;;  %v3201_v32 = vld [vmem:[#allocation7 + $0x14] ss:$8 sps:$4 sm:$0xff]  }
  0xe6   :  { %1416 = vmatpush1.bf16.msra.mxu0 %v3106_v33  ;;  %v3195_v33 = vld [vmem:[#allocation5 + $0x60c] ss:$16 sps:$4 sm:$0xff]  }
  0xe7   :  { %1417 = vmatprep.subr.bf16.mxu0 %v3114_v35  ;;  %v3193_v35 = vld [vmem:[#allocation5 + $0x608] ss:$16 sps:$4 sm:$0xff]  }
  0xe8   :  { %1586 = vmatpush1.bf16.msra.mxu1 %v3109_v34  ;;  %v3199_v34 = vld [vmem:[#allocation7 + $0x10] ss:$8 sps:$4 sm:$0xff]  }
  0xe9   :  { %1587 = vmatprep.subr.bf16.mxu1 %v3117_v36  ;;  %v3204_v36 = vld [vmem:[#allocation7 + $0x24] ss:$8 sps:$4 sm:$0xff]  }
  0xea   :  { %1418 = vmatpush1.bf16.msra.mxu0 %v3112_v37  ;;  %v3202_v37 = vld [vmem:[#allocation7 + $0x20] ss:$8 sps:$4 sm:$0xff]  }
  0xeb   :  { %1419 = vmatprep.subr.bf16.mxu0 %v3120_v39  ;;  %v3205_v39 = vld [vmem:[#allocation7 + $0x30] ss:$8 sps:$4 sm:$0xff]  }
  0xec   :  { %1588 = vmatpush1.bf16.msra.mxu1 %v3115_v38  ;;  %v3207_v38 = vld [vmem:[#allocation7 + $0x34] ss:$8 sps:$4 sm:$0xff]  }
  0xed   :  { %1589 = vmatprep.subr.bf16.mxu1 %v3123_v40  ;;  %v3210_v40 = vld [vmem:[#allocation7 + $0x44] ss:$8 sps:$4 sm:$0xff]  }
  0xee   :  { %1420 = vmatpush1.bf16.msra.mxu0 %v3118_v41  ;;  %v3208_v41 = vld [vmem:[#allocation7 + $0x40] ss:$8 sps:$4 sm:$0xff]  }
  0xef   :  { %1421 = vmatprep.subr.bf16.mxu0 %v3126_v43  ;;  %v3211_v43 = vld [vmem:[#allocation7 + $0x50] ss:$8 sps:$4 sm:$0xff]  }
  0xf0   :  { %1590 = vmatpush1.bf16.msra.mxu1 %v3121_v42  ;;  %v3213_v42 = vld [vmem:[#allocation7 + $0x54] ss:$8 sps:$4 sm:$0xff]  }
  0xf1   :  { %1591 = vmatprep.subr.bf16.mxu1 %v3129_v44  ;;  %v3216_v44 = vld [vmem:[#allocation7 + $0x64] ss:$8 sps:$4 sm:$0xff]  }
  0xf2   :  { %1422 = vmatpush1.bf16.msra.mxu0 %v3124_v45  ;;  %v3214_v45 = vld [vmem:[#allocation7 + $0x60] ss:$8 sps:$4 sm:$0xff]  }
  0xf3   :  { %1423 = vmatprep.subr.bf16.mxu0 %v3132_v47 }
  0xf4   :  { %1592 = vmatpush1.bf16.msra.mxu1 %v3127_v46 }
  0xf5   :  { %1593 = vmatprep.subr.bf16.mxu1 %v3135_v48  ;;  %v3217_v48 = vld [vmem:[#allocation7 + $0x70] ss:$8 sps:$4 sm:$0xff]  }
  0xf6   :  { %1424 = vmatpush1.bf16.msra.mxu0 %v3130_v49 }
  0xf7   :  { %1425 = vmatprep.subr.bf16.mxu0 %v3138_v51 }
  0xf8   :  { %1594 = vmatpush1.bf16.msra.mxu1 %v3133_v50  ;;  %v3222_v50 = vld [vmem:[#allocation7 + $0x84] ss:$8 sps:$4 sm:$0xff]  }
  0xf9   :  { %1595 = vmatprep.subr.bf16.mxu1 %v3141_v52  ;;  %v3225_v52 = vld [vmem:[#allocation7 + $0x94] ss:$8 sps:$4 sm:$0xff]  }
  0xfa   :  { %1426 = vmatpush1.bf16.msra.mxu0 %v3136_v53  ;;  %v3223_v53 = vld [vmem:[#allocation7 + $0x90] ss:$8 sps:$4 sm:$0xff]  }
  0xfb   :  { %1427 = vmatprep.subr.bf16.mxu0 %v3144_v55  ;;  %v3226_v55 = vld [vmem:[#allocation7 + $0xa0] ss:$8 sps:$4 sm:$0xff]  }
  0xfc   :  { %1596 = vmatpush1.bf16.msra.mxu1 %v3139_v54  ;;  %v3228_v54 = vld [vmem:[#allocation7 + $0xa4] ss:$8 sps:$4 sm:$0xff]  }
  0xfd   :  { %1597 = vmatprep.subr.bf16.mxu1 %v3147_v56  ;;  %v3231_v56 = vld [vmem:[#allocation7 + $0xb4] ss:$8 sps:$4 sm:$0xff]  }
  0xfe   :  { %1428 = vmatpush1.bf16.msra.mxu0 %v3142_v57  ;;  %v3229_v57 = vld [vmem:[#allocation7 + $0xb0] ss:$8 sps:$4 sm:$0xff]  }
  0xff   :  { %1429 = vmatprep.subr.bf16.mxu0 %v3150_v59  ;;  %v3232_v59 = vld [vmem:[#allocation7 + $0xc0] ss:$8 sps:$4 sm:$0xff]  }
 0x100   :  { %1598 = vmatpush1.bf16.msra.mxu1 %v3145_v58  ;;  %v3234_v58 = vld [vmem:[#allocation7 + $0xc4] ss:$8 sps:$4 sm:$0xff]  }
 0x101   :  { %1599 = vmatprep.subr.bf16.mxu1 %v3153_v60  ;;  %v3237_v60 = vld [vmem:[#allocation7 + $0xd4] ss:$8 sps:$4 sm:$0xff]  }
 0x102   :  { %1430 = vmatpush1.bf16.msra.mxu0 %v3148_v61  ;;  %v3235_v61 = vld [vmem:[#allocation7 + $0xd0] ss:$8 sps:$4 sm:$0xff]  }
 0x103   :  { %1431 = vmatprep.subr.bf16.mxu0 %v3156_v63  ;;  %v3238_v63 = vld [vmem:[#allocation7 + $0xe0] ss:$8 sps:$4 sm:$0xff]  }
 0x104   :  { %1600 = vmatpush1.bf16.msra.mxu1 %v3151_v62  ;;  %v3240_v62 = vld [vmem:[#allocation7 + $0xe4] ss:$8 sps:$4 sm:$0xff]  }
 0x105   :  { %1601 = vmatprep.subr.bf16.mxu1 %v3159_v1  ;;  %v3243_v1 = vld [vmem:[#allocation7 + $0xf4] ss:$8 sps:$4 sm:$0xff]  }
 0x106   :  { %1432 = vmatpush1.bf16.msra.mxu0 %v3154_v2  ;;  %v3241_v2 = vld [vmem:[#allocation7 + $0xf0] ss:$8 sps:$4 sm:$0xff]  }
 0x107   :  { %1433 = vmatprep.subr.bf16.mxu0 %v3162_v4  ;;  %v3292_v4 = vld [vmem:[#allocation8 + $0x40] sm:$0xff]  }
 0x108   :  { %1602 = vmatpush1.bf16.msra.mxu1 %v3157_v3  ;;  %v3246_v3 = vld [vmem:[#allocation7 + $0x104] ss:$8 sps:$4 sm:$0xff]  }
 0x109   :  { %1603 = vmatprep.subr.bf16.mxu1 %v3165_v5  ;;  %v3293_v5 = vld [vmem:[#allocation8] sm:$0xff]  }
 0x10a   :  { %1434 = vmatpush1.bf16.msra.mxu0 %v3160_v6  ;;  %v3294_v6 = vld [vmem:[#allocation8 + $0x48] sm:$0xff]  }
 0x10b   :  { %1435 = vmatprep.subr.bf16.mxu0 %v3168_v8  ;;  %v3296_v8 = vld [vmem:[#allocation8 + $0x50] sm:$0xff]  }
 0x10c   :  { %1604 = vmatpush1.bf16.msra.mxu1 %v3163_v7  ;;  %v3295_v7 = vld [vmem:[#allocation8 + $0x8] sm:$0xff]  }
 0x10d   :  { %1605 = vmatprep.subr.bf16.mxu1 %v3171_v9  ;;  %v3297_v9 = vld [vmem:[#allocation8 + $0x10] sm:$0xff]  }
 0x10e   :  { %1436 = vmatpush1.bf16.msra.mxu0 %v3166_v10  ;;  %v3298_v10 = vld [vmem:[#allocation8 + $0x58] sm:$0xff]  }
 0x10f   :  { %1437 = vmatprep.subr.bf16.mxu0 %v3174_v13  ;;  %v3300_v13 = vld [vmem:[#allocation8 + $0x60] sm:$0xff]  }
 0x110   :  { %1606 = vmatpush1.bf16.msra.mxu1 %v3169_v12  ;;  %v3299_v12 = vld [vmem:[#allocation8 + $0x18] sm:$0xff]  }
 0x111   :  { %1607 = vmatprep.subr.bf16.mxu1 %v3177_v14  ;;  %v3301_v14 = vld [vmem:[#allocation8 + $0x20] sm:$0xff]  }
 0x112   :  { %1438 = vmatpush1.bf16.msra.mxu0 %v3172_v15  ;;  %v3302_v15 = vld [vmem:[#allocation8 + $0x68] sm:$0xff]  }
 0x113   :  { %1439 = vmatprep.subr.bf16.mxu0 %v3180_v17 }
 0x114   :  { %1608 = vmatpush1.bf16.msra.mxu1 %v3175_v16  ;;  %v321_v16 = vlaneseq }
 0x115   :  { %1609 = vmatprep.subr.bf16.mxu1 %v3183_v18 }
 0x116   :  { %1440 = vmatpush1.bf16.msra.mxu0 %v3178_v19  ;;  %v3617_v17 = vshrl.u32 %v321_v16, 7  ;;  %v319_v19 = vld [vmem:[%s3665_s2] sm:$0xf] }
 0x117   :  { %1441 = vmatprep.subr.bf16.mxu0 %v3186_v21 }
 0x118   :  { %1610 = vmatpush1.bf16.msra.mxu1 %v3181_v20  ;;  %v323_v18 = vsub.s32 0, %v3617_v17  ;;  %v327_v20 = vsub.s32 1, %v3617_v17 }
 0x119   :  { %1611 = vmatprep.subr.bf16.mxu1 %v3189_v22 }
 0x11a   :  { %1442 = vmatpush1.bf16.msra.mxu0 %v3184_v23  ;;  %v324_v21 = vrot.slane %v319_v19, %v323_v18  ;;  %v328_v22 = vrot.slane %v319_v19, %v327_v20 }
 0x11b   :  { %2077 = vmatprep.subr.bf16.mxu0 %v3198_v27 }
 0x11c   :  { %1612 = vmatpush1.bf16.msra.mxu1 %v3187_v26 }
 0x11d   :  { %1613 = vmatprep.subr.bf16.mxu1 %v3192_v28  ;;  %1444 = vmatmul.mubr.bf16.vlgmr.msra.gmra.mrb[0].mxu0 %v120_v29 }
 0x11e   :  { %2078 = vmatpush1.bf16.msra.mxu0 %v3196_v30 }
 0x11f   :  { %2079 = vmatprep.subr.bf16.mxu0 %v3201_v32 }
 0x120   :  { %1614 = vmatpush1.bf16.msra.mxu1 %v3190_v31 }
 0x121   :  { %1626 = vmatprep.subr.bf16.mxu1 %v3195_v33 }
 0x122   :  { %2080 = vmatpush1.bf16.msra.mxu0 %v3199_v34 }
 0x123   :  { %1616 = vmatmul.mubr.bf16.vlgmr.msra.gmra.mrb[4].mxu1 %v120_v29  ;;  %2081 = vmatprep.subr.bf16.mxu0 %v3204_v36 }
 0x124   :  { %1627 = vmatpush1.bf16.msra.mxu1 %v3193_v35  ;;  %1658 = vmatprep.mubr.bf16.mxu1 %v3477_v0  ;;  %v3219_v0 = vld [vmem:[#allocation7 + $0x74] ss:$8 sps:$4 sm:$0xff]  }
 0x125   :  { %2794 = vmatprep.subr.bf16.mxu1 %v3292_v4  ;;  %v3259_v4 = vld [vmem:[#allocation7 + $0x150] ss:$8 sps:$4 sm:$0xff]  }
 0x126   :  { %2082 = vmatpush1.bf16.msra.mxu0 %v3202_v37 }
 0x127   :  { %2083 = vmatprep.subr.bf16.mxu0 %v3207_v38 }
 0x12a   :  { %2084 = vmatpush1.bf16.msra.mxu0 %v3205_v39 }
 0x12b   :  { %2085 = vmatprep.subr.bf16.mxu0 %v3210_v40 }
 0x12e   :  { %2086 = vmatpush1.bf16.msra.mxu0 %v3208_v41  ;;  %v3244_v41 = vld [vmem:[#allocation7 + $0x100] ss:$8 sps:$4 sm:$0xff]  }
 0x12f   :  { %2703 = vmatmul.mubr.msk.bf16.vlgmr.msra.gmra.mrb[4].mxu1 %vm1321_vm0, %v3601_v11  ;;  %2087 = vmatprep.subr.bf16.mxu0 %v3213_v42  ;;  %v3220_v11 = vld [vmem:[#allocation7 + $0x80] ss:$8 sps:$4 sm:$0xff]   ;;  %v331_v42 = vsub.s32 2, %v3617_v17 }
 0x130   :  { %2795 = vmatpush3.bf16.msra.mxu1 %v3293_v5  ;;  %v3264_v5 = vld [vmem:[#allocation7 + $0x164] ss:$8 sps:$4 sm:$0xff]  }
 0x131   :  { %2796 = vmatprep.subr.bf16.mxu1 %v3294_v6  ;;  %v3262_v6 = vld [vmem:[#allocation7 + $0x160] ss:$8 sps:$4 sm:$0xff]  }
 0x132   :  { %2088 = vmatpush1.bf16.msra.mxu0 %v3211_v43  ;;  %v3249_v43 = vld [vmem:[#allocation7 + $0x114] ss:$8 sps:$4 sm:$0xff]  }
 0x133   :  { %2089 = vmatprep.subr.bf16.mxu0 %v3216_v44  ;;  %v335_v44 = vsub.s32 3, %v3617_v17  ;;  %v3309_v17 = vld [vmem:[#allocation10 + $0x8] sm:$0xff]  }
 0x134   :  { %2797 = vmatpush3.bf16.msra.mxu1 %v3295_v7  ;;  %v3267_v7 = vld [vmem:[#allocation7 + $0x174] ss:$8 sps:$4 sm:$0xff]  }
 0x135   :  { %2798 = vmatprep.subr.bf16.mxu1 %v3296_v8  ;;  %v3265_v8 = vld [vmem:[#allocation7 + $0x170] ss:$8 sps:$4 sm:$0xff]  }
 0x136   :  { %v3608_v46 = vpop.f32.mrb[0].mxu1  ;;  %2090 = vmatpush1.bf16.msra.mxu0 %v3214_v45  ;;  %v332_v45 = vrot.slane %v319_v19, %v331_v42 }
 0x137   :  { %v3610_v47 = vpop.f32.mrb[1].mxu1  ;;  %2091 = vmatprep.subr.bf16.mxu0 %v3219_v0  ;;  %v3247_v0 = vld [vmem:[#allocation7 + $0x110] ss:$8 sps:$4 sm:$0xff]  }
 0x138   :  { %v3612_v49 = vpop.f32.mrb[2].mxu1  ;;  %2799 = vmatpush3.bf16.msra.mxu1 %v3297_v9  ;;  %v3270_v9 = vld [vmem:[#allocation7 + $0x184] ss:$8 sps:$4 sm:$0xff]  }
 0x139   :  { %v3614_v51 = vpop.f32.mrb[3].mxu1  ;;  %2800 = vmatprep.subr.bf16.mxu1 %v3298_v10  ;;  %v3268_v10 = vld [vmem:[#allocation7 + $0x180] ss:$8 sps:$4 sm:$0xff]  }
 0x13a   :  { %2092 = vmatpush1.bf16.msra.mxu0 %v3217_v48 }
 0x13b   :  { %2093 = vmatprep.subr.bf16.mxu0 %v3222_v50 }
 0x13c   :  { %2801 = vmatpush3.bf16.msra.mxu1 %v3299_v12  ;;  %v3273_v12 = vld [vmem:[#allocation7 + $0x194] ss:$8 sps:$4 sm:$0xff]  }
 0x13d   :  { %2802 = vmatprep.subr.bf16.mxu1 %v3300_v13  ;;  %v3271_v13 = vld [vmem:[#allocation7 + $0x190] ss:$8 sps:$4 sm:$0xff]  }
 0x13e   :  { %2094 = vmatpush1.bf16.msra.mxu0 %v3220_v11 }
 0x13f   :  { %2095 = vmatprep.subr.bf16.mxu0 %v3225_v52 }
 0x140   :  { %2803 = vmatpush3.bf16.msra.mxu1 %v3301_v14  ;;  %v3276_v14 = vld [vmem:[#allocation7 + $0x1a4] ss:$8 sps:$4 sm:$0xff]  }
 0x141   :  { %2804 = vmatprep.subr.bf16.mxu1 %v3302_v15  ;;  %v3274_v15 = vld [vmem:[#allocation7 + $0x1a0] ss:$8 sps:$4 sm:$0xff]  }
 0x142   :  { %2096 = vmatpush1.bf16.msra.mxu0 %v3223_v53  ;;  %v3255_v53 = vld [vmem:[#allocation7 + $0x134] ss:$8 sps:$4 sm:$0xff]  }
 0x143   :  { %2097 = vmatprep.subr.bf16.mxu0 %v3228_v54 }
 0x146   :  { %2098 = vmatpush1.bf16.msra.mxu0 %v3226_v55 }
 0x147   :  { %2099 = vmatprep.subr.bf16.mxu0 %v3231_v56 }
 0x14a   :  { %2100 = vmatpush1.bf16.msra.mxu0 %v3229_v57 }
 0x14b   :  { %2101 = vmatprep.subr.bf16.mxu0 %v3234_v58 }
 0x14e   :  { %2102 = vmatpush1.bf16.msra.mxu0 %v3232_v59  ;;  %v3253_v59 = vld [vmem:[#allocation7 + $0x130] ss:$8 sps:$4 sm:$0xff]  }
 0x14f   :  { %2103 = vmatprep.subr.bf16.mxu0 %v3237_v60 }
 0x152   :  { %2104 = vmatpush1.bf16.msra.mxu0 %v3235_v61 }
 0x153   :  { %2105 = vmatprep.subr.bf16.mxu0 %v3240_v62  ;;  %v3258_v62 = vld [vmem:[#allocation7 + $0x144] ss:$8 sps:$4 sm:$0xff]  }
 0x156   :  { %2106 = vmatpush1.bf16.msra.mxu0 %v3238_v63 }
 0x157   :  { %2107 = vmatprep.subr.bf16.mxu0 %v3243_v1 }
 0x15a   :  { %2108 = vmatpush1.bf16.msra.mxu0 %v3241_v2  ;;  %v3256_v2 = vld [vmem:[#allocation7 + $0x140] ss:$8 sps:$4 sm:$0xff]  }
 0x15b   :  { %2120 = vmatprep.subr.bf16.mxu0 %v3246_v3  ;;  %v3261_v3 = vld [vmem:[#allocation7 + $0x154] ss:$8 sps:$4 sm:$0xff]  }
 0x1f0   :  { %v1445_v23 = vpop.f32.mrb[0].mxu0 }
 0x1f1   :  { %v2845_v24 = vadd.f32 %v1445_v23, %v324_v21  ;;  %v1447_v25 = vpop.f32.mrb[1].mxu0  ;;  %v3280_v23 = vld [vmem:[#allocation7 + $0x1c0] ss:$8 sps:$4 sm:$0xff]  }
 0x1f2   :  { %v2847_v26 = vadd.f32 %v1447_v25, %v328_v22  ;;  %v1449_v27 = vpop.f32.mrb[2].mxu0  ;;  %v3283_v25 = vld [vmem:[#allocation7 + $0x1d0] ss:$8 sps:$4 sm:$0xff]  }
 0x1f3   :  { %v2846_v28 = vadd.f32 %v2845_v24, %v3608_v46  ;;  %v2849_v29 = vadd.f32 %v1449_v27, %v324_v21  ;;  %v1451_v30 = vpop.f32.mrb[3].mxu0  ;;  %v336_v46 = vrot.slane %v319_v19, %v335_v44  ;;  %v3279_v19 = vld [vmem:[#allocation7 + $0x1b4] ss:$8 sps:$4 sm:$0xff]   ;;  %v3277_v21 = vld [vmem:[#allocation7 + $0x1b0] ss:$8 sps:$4 sm:$0xff]  }
 0x1f4   :  { %v2848_v31 = vadd.f32 %v2847_v26, %v3610_v47  ;;  %v2851_v32 = vadd.f32 %v1451_v30, %v328_v22  ;;  %v3252_v47 = vld [vmem:[#allocation7 + $0x124] ss:$8 sps:$4 sm:$0xff]   ;;  %v3285_v24 = vld [vmem:[#allocation7 + $0x1d4] ss:$8 sps:$4 sm:$0xff]   ;;  %v3286_v27 = vld [vmem:[#allocation7 + $0x1e0] ss:$8 sps:$4 sm:$0xff]  }
 0x1f5   :  { %v2850_v33 = vadd.f32 %v2849_v29, %v3612_v49  ;;  %v1669_v35 = vmax.f32 %v2846_v28, 0.0  ;;  %v3282_v22 = vld [vmem:[#allocation7 + $0x1c4] ss:$8 sps:$4 sm:$0xff]   ;;  %v3291_v28 = vld [vmem:[#allocation7 + $0x1f4] ss:$8 sps:$4 sm:$0xff]  }
 0x1f6   :  { %v2852_v34 = vadd.f32 %v2851_v32, %v3614_v51  ;;  %v1670_v37 = vmax.f32 %v2848_v31, 0.0  ;;  %v3250_v51 = vld [vmem:[#allocation7 + $0x120] ss:$8 sps:$4 sm:$0xff]   ;;  %v3288_v26 = vld [vmem:[#allocation7 + $0x1e4] ss:$8 sps:$4 sm:$0xff]   ;;  %v3304_v31 = vld [vmem:[#allocation8 + $0x70] sm:$0xff]  }
 0x1f7   :  { %v1673_v36 = vmax.f32 %v2850_v33, 0.0  ;;  %v3289_v29 = vld [vmem:[#allocation7 + $0x1f0] ss:$8 sps:$4 sm:$0xff]   ;;  %v3303_v30 = vld [vmem:[#allocation8 + $0x28] sm:$0xff]  }
 0x1f8   :  { %v1674_v38 = vmax.f32 %v2852_v34, 0.0  ;;  %2805 = vmatpush3.bf16.msra.mxu1 %v3303_v30  ;;  %v3305_v32 = vld [vmem:[#allocation8 + $0x30] sm:$0xff]   ;;  %v3306_v33 = vld [vmem:[#allocation8 + $0x78] sm:$0xff]  }
 0x1f9   :  { %v1677_v39 = vpack.c.bf16 %v1673_v36, %v1669_v35  ;;  %2806 = vmatprep.subr.bf16.mxu1 %v3304_v31  ;;  %v3307_v34 = vld [vmem:[#allocation8 + $0x38] sm:$0xff]   ;;  %v3478_v35 = vmov 0.0   ;;  %v1745_v36 = vld [vmem:[%s3667_s4] sm:$0x3] }
 0x1fa   :  { %v1678_v40 = vpack.c.bf16 %v1674_v38, %v1670_v37  ;;  %v1750_v37 = vrot.slane %v1745_v36, %v323_v18  ;;  %v1754_v38 = vrot.slane %v1745_v36, %v327_v20  ;;  %v3310_v18 = vld [vmem:[#allocation10 + $0x10] sm:$0xff]   ;;  %v3311_v20 = vld [vmem:[#allocation10 + $0x18] sm:$0xff]  }
 0x1fc   :  { %2109 = vmatprep.mubr.bf16.mxu0 %v1678_v40  ;;  %2807 = vmatpush3.bf16.msra.mxu1 %v3305_v32 }
 0x1fd   :  { %2110 = vmatmul.mubr.bf16.vlgmr.msra.gmra.mrb[4].mxu0 %v1677_v39  ;;  %2808 = vmatprep.subr.bf16.mxu1 %v3306_v33 }
 0x1fe   :  { %2121 = vmatpush1.bf16.msra.mxu0 %v3244_v41 }
 0x1ff   :  { %2122 = vmatprep.subr.bf16.mxu0 %v3249_v43 }
 0x200   :  { %2809 = vmatpush3.bf16.msra.mxu1 %v3307_v34 }
 0x201   :  { %2825 = vmatprep.subr.bf16.mxu1 %v3478_v35 }
 0x202   :  { %v1660_v48 = vpop.f32.mrb[4].mxu1  ;;  %2123 = vmatpush1.bf16.msra.mxu0 %v3247_v0 }
 0x203   :  { %v2853_v49 = vadd.f32 %v1660_v48, %v332_v45  ;;  %v1662_v50 = vpop.f32.mrb[5].mxu1  ;;  %2124 = vmatprep.subr.bf16.mxu0 %v3252_v47 }
 0x204   :  { %v2854_v11 = vadd.f32 %v1662_v50, %v336_v46  ;;  %v1664_v52 = vpop.f32.mrb[6].mxu1 }
 0x205   :  { %v2855_v54 = vadd.f32 %v1664_v52, %v332_v45  ;;  %v1666_v55 = vpop.f32.mrb[7].mxu1  ;;  %v1671_v57 = vmax.f32 %v2853_v49, 0.0  ;;  %v3312_v52 = vld [vmem:[#allocation10 + $0x20] sm:$0xff]  }
 0x206   :  { %v2856_v56 = vadd.f32 %v1666_v55, %v336_v46  ;;  %2125 = vmatpush1.bf16.msra.mxu0 %v3250_v51  ;;  %v1672_v60 = vmax.f32 %v2854_v11, 0.0  ;;  %v3308_v11 = vld [vmem:[#allocation10] sm:$0xff]   ;;  %v3315_v55 = vld [vmem:[#allocation10 + $0x38] sm:$0xff]  }
 0x207   :  { %v1675_v58 = vmax.f32 %v2855_v54, 0.0  ;;  %2126 = vmatprep.subr.bf16.mxu0 %v3255_v53  ;;  %v3313_v53 = vld [vmem:[#allocation10 + $0x28] sm:$0xff]   ;;  %v3314_v54 = vld [vmem:[#allocation10 + $0x30] sm:$0xff]  }
 0x208   :  { %v1676_v61 = vmax.f32 %v2856_v56, 0.0 }
 0x209   :  { %v1679_v63 = vpack.c.bf16 %v1675_v58, %v1671_v57  ;;  %v2768_v57 = vld [vmem:[%s3669_s6] ss:$0 sm:$0xff]  ;;  %s3480_s6 = smov [#allocation11]  }
 0x20a   :  { %v1680_v1 = vpack.c.bf16 %v1676_v61, %v1672_v60  ;;  %2127 = vmatpush1.bf16.msra.mxu0 %v3253_v59 }
 0x20b   :  { %2128 = vmatprep.subr.bf16.mxu0 %v3258_v62 }
 0x20c   :  { %2152 = vmatprep.mubr.bf16.mxu0 %v1680_v1 }
 0x20e   :  { %2129 = vmatpush1.bf16.msra.mxu0 %v3256_v2 }
 0x20f   :  { %2130 = vmatprep.subr.bf16.mxu0 %v3261_v3 }
 0x212   :  { %2131 = vmatpush1.bf16.msra.mxu0 %v3259_v4 }
 0x213   :  { %2132 = vmatprep.subr.bf16.mxu0 %v3264_v5  ;;  %v2461_v5 = vand.u32 127, %v321_v16 }
 0x215   :  { %vm2462_vm2 = vcmp.lt.s32.totalorder %v2461_v5, 10 }
 0x216   :  { %2133 = vmatpush1.bf16.msra.mxu0 %v3262_v6  ;;  %v2785_v6 = vld [vmem:[%s3671_s8] ss:$0 sm:$0xff]  ;;  %s2492_s8 = sshll.u32 %s3480_s6, 4  ;;  %s2493_s8 = int_to_ptr.vmem [resolvable:$true] %s2492_s8 }
 0x217   :  { %2134 = vmatprep.subr.bf16.mxu0 %v3267_v7  ;;  %s3434_s14 = scalar_lea.vmem %s2493_s8, 256  ;;  %p3439_p13 = scmp.lt.s32.totalorder %s2493_s8, %s2493_s8 }
 0x218   :  { %p3435_p12 = scmp.ne.s32.totalorder %s2493_s8, %s3434_s14  ;;  %p3440_p0 = scmp.lt.s32.totalorder %s3434_s14, %s3434_s14 }
 0x21a   :  { %2135 = vmatpush1.bf16.msra.mxu0 %v3265_v8  ;;  %p3441_p1 = por %p3440_p0, %p3439_p13 }
 0x21b   :  { %2136 = vmatprep.subr.bf16.mxu0 %v3270_v9 }
 0x21c   :  { %p3442_p2 = pnand %p3441_p1, %p3435_p12 }
 0x21e   :  { %2137 = vmatpush1.bf16.msra.mxu0 %v3268_v10 }
 0x21f   :  { %2138 = vmatprep.subr.bf16.mxu0 %v3273_v12 }
 0x222   :  { %2139 = vmatpush1.bf16.msra.mxu0 %v3271_v13 }
 0x223   :  { %2140 = vmatprep.subr.bf16.mxu0 %v3276_v14 }
 0x226   :  { %2141 = vmatpush1.bf16.msra.mxu0 %v3274_v15 }
 0x227   :  { %2142 = vmatprep.subr.bf16.mxu0 %v3279_v19 }
 0x22a   :  { %2143 = vmatpush1.bf16.msra.mxu0 %v3277_v21 }
 0x22b   :  { %2144 = vmatprep.subr.bf16.mxu0 %v3282_v22 }
 0x22e   :  { %2145 = vmatpush1.bf16.msra.mxu0 %v3280_v23 }
 0x22f   :  { %2146 = vmatprep.subr.bf16.mxu0 %v3285_v24 }
 0x232   :  { %2147 = vmatpush1.bf16.msra.mxu0 %v3283_v25 }
 0x233   :  { %2148 = vmatprep.subr.bf16.mxu0 %v3288_v26 }
 0x236   :  { %2149 = vmatpush1.bf16.msra.mxu0 %v3286_v27 }
 0x237   :  { %2150 = vmatprep.subr.bf16.mxu0 %v3291_v28 }
 0x23a   :  { %2151 = vmatpush1.bf16.msra.mxu0 %v3289_v29 }
 0x23d   :  { %2153 = vmatmul.mubr.bf16.vlgmr.msra.gmra.mrb[4].mxu0 %v1679_v63 }
 0x310   :  { %v2154_v39 = vpop.f32.mrb[4].mxu0 }
 0x311   :  { %v2857_v40 = vadd.f32 %v2154_v39, %v1750_v37  ;;  %v2156_v41 = vpop.f32.mrb[5].mxu0 }
 0x312   :  { %v2858_v42 = vadd.f32 %v2156_v41, %v1754_v38  ;;  %v2158_v43 = vpop.f32.mrb[6].mxu0 }
 0x313   :  { %v2859_v44 = vadd.f32 %v2158_v43, %v1750_v37  ;;  %v2160_v45 = vpop.f32.mrb[7].mxu0  ;;  %v2163_v46 = vmax.f32 %v2857_v40, 0.0 }
 0x314   :  { %v2860_v0 = vadd.f32 %v2160_v45, %v1754_v38  ;;  %v2164_v48 = vmax.f32 %v2858_v42, 0.0 }
 0x315   :  { %v2165_v47 = vmax.f32 %v2859_v44, 0.0 }
 0x316   :  { %v2166_v49 = vmax.f32 %v2860_v0, 0.0 }
 0x317   :  { %v2167_v50 = vpack.c.bf16 %v2165_v47, %v2163_v46 }
 0x318   :  { %v2168_v51 = vpack.c.bf16 %v2166_v49, %v2164_v48 }
 0x31a   :  { %2336 = vmatprep.mubr.bf16.mxu1 %v2168_v51 }
 0x31b   :  { %2337 = vmatmul.mubr.bf16.vlgmr.msra.gmra.mrb[8].mxu1 %v2167_v50 }
 0x31c   :  { %2826 = vmatpush3.bf16.msra.mxu1 %v3308_v11  ;;  %2841 = vmatprep.mubr.msk.bf16.mxu1 %vm3479_vm1, %v3478_v35 }
 0x31d   :  { %2827 = vmatprep.subr.bf16.mxu1 %v3478_v35 }
 0x320   :  { %2828 = vmatpush3.bf16.msra.mxu1 %v3309_v17 }
 0x321   :  { %2829 = vmatprep.subr.bf16.mxu1 %v3478_v35 }
 0x324   :  { %2830 = vmatpush3.bf16.msra.mxu1 %v3310_v18 }
 0x325   :  { %2831 = vmatprep.subr.bf16.mxu1 %v3478_v35 }
 0x328   :  { %2832 = vmatpush3.bf16.msra.mxu1 %v3311_v20 }
 0x329   :  { %2833 = vmatprep.subr.bf16.mxu1 %v3478_v35 }
 0x32c   :  { %2834 = vmatpush3.bf16.msra.mxu1 %v3312_v52 }
 0x32d   :  { %2835 = vmatprep.subr.bf16.mxu1 %v3478_v35 }
 0x330   :  { %2836 = vmatpush3.bf16.msra.mxu1 %v3313_v53 }
 0x331   :  { %2837 = vmatprep.subr.bf16.mxu1 %v3478_v35 }
 0x334   :  { %2838 = vmatpush3.bf16.msra.mxu1 %v3314_v54 }
 0x335   :  { %2839 = vmatprep.subr.bf16.mxu1 %v3478_v35 }
 0x338   :  { %2840 = vmatpush3.bf16.msra.mxu1 %v3315_v55 }
 0x3ee   :  { %v2810_v56 = vpop.f32.mrb[8].mxu1 }
 0x3ef   :  { %v2811_v58 = vpop.f32.mrb[9].mxu1 }
 0x3f0   :  { %v2812_v59 = vadd.f32 %v2811_v58, %v2810_v56  ;;  %v2813_v60 = vpop.f32.mrb[10].mxu1 }
 0x3f1   :  { %v2814_v61 = vpop.f32.mrb[11].mxu1 }
 0x3f2   :  { %v2339_v62 = vadd.f32 %v2812_v59, %v2768_v57  ;;  %v2815_v63 = vadd.f32 %v2814_v61, %v2813_v60 }
 0x3f4   :  { %v2342_v1 = vadd.f32 %v2815_v63, %v2768_v57  ;;  %v2345_v2 = vmax.f32 %v2339_v62, 0.0 }
 0x3f6   :  { %v2346_v3 = vmax.f32 %v2342_v1, 0.0 }
 0x3f8   :  { %v2347_v4 = vpack.c.bf16 %v2346_v3, %v2345_v2 }
 0x3fa   :  { %2842 = vmatmul.mubr.bf16.vlgmr.msra.gmra.mrb[12].mxu1 %v2347_v4 }
 0x4cd   :  { %v2453_v7 = vpop.f32.mrb[12].mxu1 }
 0x4ce   :  { %v2454_v8 = vadd.f32 %v2785_v6, %v2453_v7  ;;  %v2843_v9 = vpop.f32.mrb[13].mxu1 }
 0x4cf   :  { %v2456_v10 = vpop.f32.mrb[14].mxu1 }
 0x4d0   :  { %v2457_v12 = vadd.f32 %v2785_v6, %v2456_v10  ;;  %v2844_v13 = vpop.f32.mrb[15].mxu1  ;;  %v2463_v14 = vsel %vm2462_vm2, %v2454_v8, -1e+30 }
 0x4d1   :  { %2465 = vmax.xlane.f32.xlu0 %v2463_v14 }
 0x4d2   :  { %v2464_v15 = vsel %vm2462_vm2, %v2457_v12, -1e+30 }
 0x4d5   :  { %2467 = vmax.xlane.f32.xlu0 %v2464_v15 }
 0x55e   :  { %v2466_v19 = vpop.xlane.xlu0 %2465 }
 0x55f   :  { %v2469_v21 = vsub.f32 %v2463_v14, %v2466_v19 }
 0x561   :  { %v2471_v22 = vmul.f32 1.442695, %v2469_v21 }
 0x562   :  { %v2468_v23 = vpop.xlane.xlu0 %2467 }
 0x563   :  { %v2470_v16 = vsub.f32 %v2464_v15, %v2468_v23  ;;  %3316 = vpow2.f32 %v2471_v22 }
 0x565   :  { %v2473_v24 = vmul.f32 1.442695, %v2470_v16 }
 0x567   :  { %3318 = vpow2.f32 %v2473_v24 }
 0x56d   :  { %v3317_v25 = vpop.eup %3316 }
 0x56e   :  { %2475 = vadd.xlane.f32.xlu1 %v3317_v25 }
 0x571   :  { %v3319_v26 = vpop.eup %3318 }
 0x572   :  { %2477 = vadd.xlane.f32.xlu1 %v3319_v26 }
 0x5fb   :  { %v2476_v27 = vpop.xlane.xlu1 %2475 }
 0x5fc   :  { %3320 = vlog2.f32 %v2476_v27 }
 0x5ff   :  { %v2478_v28 = vpop.xlane.xlu1 %2477 }
 0x600   :  { %3322 = vlog2.f32 %v2478_v28 }
 0x606   :  { %v3321_v29 = vpop.eup %3320 }
 0x607   :  { %v2480_v30 = vmul.f32 0.6931472, %v3321_v29 }
 0x609   :  { %v2483_v31 = vsub.f32 %v2469_v21, %v2480_v30 }
 0x60a   :  { %v3323_v32 = vpop.eup %3322 }
 0x60b   :  { %2485 = vst [vmem:[#allocation11] sm:$0xff] %v2483_v31  ;;  %v2482_v33 = vmul.f32 0.6931472, %v3323_v32 }
 0x60d   :  { %v2484_v34 = vsub.f32 %v2470_v16, %v2482_v33 }
 0x60f   :  { %2486 = vst [vmem:[#allocation11 + $0x8] sm:$0xff] %v2484_v34 }
 0x610   :  { %3445 = shalt.err (!%p3442_p2)
}
 0x611   :  { %s3446_s18 = scalar_lea.hbm %s3672_s9, 256 }
 0x612   :  { %p3447_p3 = scmp.ne.s32.totalorder %s3672_s9, %s3446_s18  ;;  %p3450_p4 = scmp.lt.u32.totalorder %s3446_s18, %s3672_s9 }
 0x614   :  { %p3452_p5 = pnand %p3450_p4, %p3447_p3 }
 0x616   :  { %3455 = shalt.err (!%p3452_p5)
}
 0x617   :  { %2498 = dma.vmem_to_hbm [thread:$0]  %s2493_s8, 256, %s3672_s9, [#allocation4], %s3474_s0, %s3474_s0, %s3475_s16  }
 0x618   :  { %3462 = dma.done.wait [#allocation4], 256  }
 0x619   :  { %3463 = vsyncadd [#allocation4], 4294967040 }
 0x61a   :  { %2502 = vsyncpa [#allocation3], 1 }
 0x61b   :  { %2503 = vsyncpa [#allocation6], 1 }
 0x61c   :  { %2504 = vsyncpa [#allocation9], 1 }
 0x61d   :  { %2505 = vsyncpa [#allocation4], 1 }

</bundles_post_ra>
